<compile_context>
chip_gen: v7x
topology: tpu7x:2x2x1
jax: 0.10.0
libtpu: 0.0.40
codegen_flags: <defaults>
</compile_context>

<pallas_src>
import functools

import jax
import jax.numpy as jnp
from jax.experimental import pallas as pl
from jax.experimental.pallas import tpu as pltpu


def _round_up(x, m):
    return -(-x // m) * m


# ----------------------------------------------------------------------------
# Kernel
# ----------------------------------------------------------------------------
def _convlstm_gate_kernel(x_ref, h_ref, c_ref, wx_ref, wh_ref, b_ref,
                          hnew_ref, cnew_ref):
    """One tile of pixels: fused (X@Wx + H@Wh + b) -> gates -> LSTM update.

    cp (padded Cout) is a multiple of 128, so every gate slice below is a free
    lane-aligned view and both output stores are lane-dense. Gate math and the
    cell state are kept in f32 (v5e has no bf16 VPU/EUP; the LSTM cell state
    must not accumulate bf16 rounding error across timesteps).
    """
    cp = cnew_ref.shape[-1]
    z = (jnp.dot(x_ref[...], wx_ref[...], preferred_element_type=jnp.float32)
         + jnp.dot(h_ref[...], wh_ref[...], preferred_element_type=jnp.float32)
         + b_ref[...])
    # gate order matches the PyTorch forward: input, forget, cell, output
    i_g = jax.nn.sigmoid(z[:, 0 * cp:1 * cp])
    f_g = jax.nn.sigmoid(z[:, 1 * cp:2 * cp])
    g_g = jnp.tanh(z[:, 2 * cp:3 * cp])
    o_g = jax.nn.sigmoid(z[:, 3 * cp:4 * cp])

    c_new = f_g * c_ref[...] + i_g * g_g          # c_ref is f32
    h_new = o_g * jnp.tanh(c_new)

    cnew_ref[...] = c_new                          # cell state stays f32
    hnew_ref[...] = h_new.astype(hnew_ref.dtype)


# ----------------------------------------------------------------------------
# Tiling / pallas_call wrapper
# ----------------------------------------------------------------------------
def _choose_tile_n(n_rows, cin, cp, dbytes, *,
                   vmem_budget_bytes=8 * 1024 * 1024,
                   min_tile=256, max_tile=2048, min_grid_steps=4):
    """Pick the row tile from a VMEM budget for the double-buffered streams.

    - 256-aligned when large (v6e 256-wide MXU, v5e 128-lane MXU, 8-sublane).
    - capped so the 1-D 'parallel' grid keeps >= min_grid_steps steps
      (feeds both TensorCores on v7x).
    - conservative 8 MiB budget fits the default scoped VMEM limit on
      v5e / v6e / v7x without raising vmem_limit_bytes.
    """
    # Double-buffered per-row bytes: x + h + h_new in compute dtype, c + c_new f32.
    per_row = 2 * (cin * dbytes + cp * (2 * dbytes + 2 * 4))
    tile = vmem_budget_bytes // max(per_row, 1)
    tile = max(min_tile, min(max_tile, (tile // 256) * 256))
    while tile > min_tile and -(-n_rows // tile) < min_grid_steps:
        tile //= 2
    # Don't over-pad tiny inputs; keep 16-row alignment (bf16 sublane packing).
    tile = min(tile, max(16, _round_up(n_rows, 16)))
    return max(16, (tile // 16) * 16)


def _convlstm_step_flat(x_flat, h_flat, c_flat, wx, wh, b):
    """x_flat: (N, Cin) compute dtype, h_flat: (N, Cp) compute dtype,
    c_flat: (N, Cp) f32, wx: (Cin, 4*Cp), wh: (Cp, 4*Cp), b: (1, 4*Cp) f32.
    Returns (h_new, c_new): (N, Cp) in (compute dtype, f32)."""
    n, cin = x_flat.shape
    cp = h_flat.shape[-1]
    dbytes = jnp.dtype(x_flat.dtype).itemsize
    tile_n = _choose_tile_n(n, cin, cp, dbytes)

    n_pad = _round_up(n, tile_n)
    if n_pad > n:
        rpad = ((0, n_pad - n), (0, 0))
        x_flat = jnp.pad(x_flat, rpad)
        h_flat = jnp.pad(h_flat, rpad)
        c_flat = jnp.pad(c_flat, rpad)

    grid = (n_pad // tile_n,)
    out_shape = (jax.ShapeDtypeStruct((n_pad, cp), x_flat.dtype),   # h_new
                 jax.ShapeDtypeStruct((n_pad, cp), jnp.float32))    # c_new (f32)

    h_new, c_new = pl.pallas_call(
        _convlstm_gate_kernel,
        out_shape=out_shape,
        grid_spec=pltpu.PrefetchScalarGridSpec(
            num_scalar_prefetch=0,
            grid=grid,
            in_specs=[
                pl.BlockSpec((tile_n, cin), lambda i: (i, 0)),      # x
                pl.BlockSpec((tile_n, cp), lambda i: (i, 0)),       # h
                pl.BlockSpec((tile_n, cp), lambda i: (i, 0)),       # c (f32)
                pl.BlockSpec((cin, 4 * cp), lambda i: (0, 0)),      # Wx (resident)
                pl.BlockSpec((cp, 4 * cp), lambda i: (0, 0)),       # Wh (resident)
                pl.BlockSpec((1, 4 * cp), lambda i: (0, 0)),        # bias (f32)
            ],
            out_specs=[
                pl.BlockSpec((tile_n, cp), lambda i: (i, 0)),       # h_new
                pl.BlockSpec((tile_n, cp), lambda i: (i, 0)),       # c_new
            ],
        ),
        compiler_params=pltpu.CompilerParams(
            dimension_semantics=("parallel",)),
    )(x_flat, h_flat, c_flat, wx, wh, b)
    return h_new[:n], c_new[:n]


# ----------------------------------------------------------------------------
# Parameters (folded 1x1 conv + inference BN, stacked per-gate)
# ----------------------------------------------------------------------------
def _fold_bn(w, conv_b, gamma, beta, mean, var, eps=1e-5):
    """Fold inference-mode BatchNorm2d into a 1x1 conv (channel matmul).

    w: (Cin, Cout), conv_b: (Cout,). Returns (w_eff, b_eff) so that
    BN(conv(x)) == x @ w_eff + b_eff."""
    scale = gamma / jnp.sqrt(var + eps)                 # (Cout,)
    w_eff = w * scale[None, :]
    b_eff = scale * (conv_b - mean) + beta
    return w_eff, b_eff


def make_shortcut_params(key, cin, cout, dtype=jnp.float32):
    """Deterministically initialize 8 conv (1x1) + 8 BN layers and fold them
    into stacked gate weights: Wx (Cin, 4*Cout), Wh (Cout, 4*Cout), b (1, 4*Cout).

    NOTE: summing the two BN biases per gate is only valid for the
    1x1-conv / inference-BN interpretation documented at the top."""
    keys = jax.random.split(key, 8 * 4)
    wx_cols, wh_cols, b_cols = [], [], []
    k = 0
    for _ in range(4):
        # x-branch conv + BN
        w_x = 0.2 * jax.random.normal(keys[k], (cin, cout), dtype); k += 1
        b_x = 0.1 * jax.random.normal(keys[k], (cout,), dtype); k += 1
        gamma_x = 1.0 + 0.1 * jax.random.normal(keys[k], (cout,), dtype); k += 1
        beta_x = 0.05 * jax.random.normal(keys[k], (cout,), dtype); k += 1
        mean_x = 0.1 * jnp.arange(cout, dtype=dtype) / cout
        var_x = 1.0 + 0.05 * jnp.arange(cout, dtype=dtype) / cout
        wxe, bxe = _fold_bn(w_x, b_x, gamma_x, beta_x, mean_x, var_x)

        # h-branch conv + BN
        w_h = 0.2 * jax.random.normal(keys[k], (cout, cout), dtype); k += 1
        b_h = 0.1 * jax.random.normal(keys[k], (cout,), dtype); k += 1
        gamma_h = 1.0 + 0.1 * jax.random.normal(keys[k], (cout,), dtype); k += 1
        beta_h = 0.05 * jax.random.normal(keys[k], (cout,), dtype); k += 1
        mean_h = -0.1 * jnp.arange(cout, dtype=dtype) / cout
        var_h = 1.0 + 0.03 * jnp.arange(cout, dtype=dtype) / cout
        whe, bhe = _fold_bn(w_h, b_h, gamma_h, beta_h, mean_h, var_h)

        wx_cols.append(wxe)
        wh_cols.append(whe)
        b_cols.append(bxe + bhe)

    wx = jnp.concatenate(wx_cols, axis=1)            # (Cin, 4*Cout)
    wh = jnp.concatenate(wh_cols, axis=1)            # (Cout, 4*Cout)
    b = jnp.concatenate(b_cols, axis=0)[None, :]     # (1, 4*Cout)
    return wx, wh, b


def _pad_gate_cols(m, cout, cp):
    """(..., 4*cout) -> (..., 4*cp): right-pad each gate's columns to cp lanes."""
    if cp == cout:
        return m
    parts = []
    for g in range(4):
        blk = m[..., g * cout:(g + 1) * cout]
        pad = [(0, 0)] * (m.ndim - 1) + [(0, cp - cout)]
        parts.append(jnp.pad(blk, pad))
    return jnp.concatenate(parts, axis=-1)


# ----------------------------------------------------------------------------
# Module-level forward (NCHW in/out, matching Shortcut.forward)
# ----------------------------------------------------------------------------
def shortcut_forward(x_nchw, params, *, stride, cout,
                     last_h=None, last_cell=None, compute_dtype=None):
    """Forward pass matching Shortcut.forward. x_nchw: (B, Cin, H, W).

    Returns (next_h, next_cell). next_h has x's dtype; next_cell is f32
    (cell state is carried in f32). Both are (B, Cout, H//stride, W//stride).

    compute_dtype (e.g. jnp.bfloat16) selects the matmul/storage dtype for
    x, h and the weights; gate math and the cell state always run in f32.
    """
    wx, wh, b = params
    B, Cin, H, W = x_nchw.shape
    Ho, Wo = H // stride, W // stride
    n = B * Ho * Wo
    cp = _round_up(cout, 128)                 # lane-aligned gate width
    cdt = compute_dtype if compute_dtype is not None else x_nchw.dtype

    # 1x1 strided conv == spatial subsample + per-pixel channel matmul.
    # Subsample + NCHW -> pixel-major flatten fuse into a single XLA copy.
    x_flat = jnp.transpose(x_nchw[:, :, ::stride, ::stride],
                           (0, 2, 3, 1)).reshape(n, Cin).astype(cdt)

    if last_h is None:
        h_flat = jnp.zeros((n, cp), cdt)
    else:
        h_flat = jnp.transpose(last_h, (0, 2, 3, 1)).reshape(n, cout).astype(cdt)
        h_flat = jnp.pad(h_flat, ((0, 0), (0, cp - cout)))
    if last_cell is None:
        c_flat = jnp.zeros((n, cp), jnp.float32)
    else:
        c_flat = jnp.transpose(last_cell, (0, 2, 3, 1)).reshape(n, cout)
        c_flat = jnp.pad(c_flat.astype(jnp.float32), ((0, 0), (0, cp - cout)))

    # Lane-align each gate's columns; zero rows for the padded h channels so
    # they can never leak into the real outputs.
    wx_p = _pad_gate_cols(wx, cout, cp).astype(cdt)                          # (Cin, 4*cp)
    wh_p = jnp.pad(_pad_gate_cols(wh, cout, cp),
                   ((0, cp - cout), (0, 0))).astype(cdt)                     # (cp, 4*cp)
    b_p = _pad_gate_cols(b, cout, cp).astype(jnp.float32)                    # (1, 4*cp)

    h_new, c_new = _convlstm_step_flat(x_flat, h_flat, c_flat, wx_p, wh_p, b_p)

    # Drop channel padding + back to NCHW (single fused copy each).
    h_out = jnp.transpose(h_new[:, :cout].reshape(B, Ho, Wo, cout),
                          (0, 3, 1, 2)).astype(x_nchw.dtype)
    c_out = jnp.transpose(c_new[:, :cout].reshape(B, Ho, Wo, cout),
                          (0, 3, 1, 2))
    return h_out, c_out


# ----------------------------------------------------------------------------
# Plain-JAX reference (same math, supports nonzero recurrent state)
# ----------------------------------------------------------------------------
def _reference_forward(x_nchw, params, *, stride, cout,
                       last_h=None, last_cell=None):
    wx, wh, b = params
    B, Cin, H, W = x_nchw.shape
    Ho, Wo = H // stride, W // stride
    n = B * Ho * Wo
    x_flat = jnp.transpose(x_nchw[:, :, ::stride, ::stride],
                           (0, 2, 3, 1)).reshape(n, Cin)
    if last_h is None:
        h_flat = jnp.zeros((n, cout), jnp.float32)
    else:
        h_flat = jnp.transpose(last_h, (0, 2, 3, 1)).reshape(n, cout)
    if last_cell is None:
        c_flat = jnp.zeros((n, cout), jnp.float32)
    else:
        c_flat = jnp.transpose(last_cell, (0, 2, 3, 1)).reshape(n, cout)
    z = x_flat @ wx + h_flat @ wh + b
    i_g = jax.nn.sigmoid(z[:, 0 * cout:1 * cout])
    f_g = jax.nn.sigmoid(z[:, 1 * cout:2 * cout])
    g_g = jnp.tanh(z[:, 2 * cout:3 * cout])
    o_g = jax.nn.sigmoid(z[:, 3 * cout:4 * cout])
    c_new = f_g * c_flat + i_g * g_g
    h_new = o_g * jnp.tanh(c_new)
    h_out = jnp.transpose(h_new.reshape(B, Ho, Wo, cout), (0, 3, 1, 2))
    c_out = jnp.transpose(c_new.reshape(B, Ho, Wo, cout), (0, 3, 1, 2))
    return h_out, c_out


if __name__ == "__main__":
    key = jax.random.PRNGKey(0)
    k_x1, k_x2, k_p = jax.random.split(key, 3)

    B, Cin, H, W = 2, 4, 16, 16
    stride = 2
    Cout = 8

    x1 = jax.random.normal(k_x1, (B, Cin, H, W), jnp.float32)
    x2 = jax.random.normal(k_x2, (B, Cin, H, W), jnp.float32)
    params = make_shortcut_params(k_p, Cin, Cout)

    fwd = jax.jit(functools.partial(shortcut_forward, stride=stride, cout=Cout))

    # --- step 1: lazy-initialized (zero) recurrent state -------------------
    h1, c1 = fwd(x1, params)
    jax.block_until_ready((h1, c1))
    assert h1.shape == (B, Cout, H // stride, W // stride)
    assert c1.shape == (B, Cout, H // stride, W // stride)

    rh1, rc1 = _reference_forward(x1, params, stride=stride, cout=Cout)
    assert jnp.allclose(h1, rh1, atol=1e-5, rtol=1e-5)
    assert jnp.allclose(c1, rc1, atol=1e-5, rtol=1e-5)

    # --- step 2: nonzero last_h / last_cell (validates H@Wh and f*c paths) -
    h2, c2 = fwd(x2, params, last_h=h1, last_cell=c1)
    jax.block_until_ready((h2, c2))
    rh2, rc2 = _reference_forward(x2, params, stride=stride, cout=Cout,
                                  last_h=h1, last_cell=c1)
    assert jnp.allclose(h2, rh2, atol=1e-5, rtol=1e-5)
    assert jnp.allclose(c2, rc2, atol=1e-5, rtol=1e-5)

    # --- bf16 compute path (storage/matmul bf16, gates + cell state f32) ---
    fwd_bf16 = jax.jit(functools.partial(shortcut_forward, stride=stride,
                                         cout=Cout, compute_dtype=jnp.bfloat16))
    hb, cb = fwd_bf16(x2, params, last_h=h1, last_cell=c1)
    jax.block_until_ready((hb, cb))
    assert jnp.allclose(hb.astype(jnp.float32), rh2, atol=3e-2, rtol=3e-2)
    assert jnp.allclose(cb, rc2, atol=3e-2, rtol=3e-2)

    print("KERNEL_OK")
</pallas_src>

<mosaic_0001>
module attributes {stable_mosaic.version = 11 : i64} {
  func.func @_convlstm_gate_kernel(%arg0: i32, %arg1: memref<128x4xf32, #tpu.memory_space<vmem>>, %arg2: memref<128x128xf32, #tpu.memory_space<vmem>>, %arg3: memref<128x128xf32, #tpu.memory_space<vmem>>, %arg4: memref<4x512xf32, #tpu.memory_space<vmem>>, %arg5: memref<128x512xf32, #tpu.memory_space<vmem>>, %arg6: memref<1x512xf32, #tpu.memory_space<vmem>>, %arg7: memref<128x128xf32, #tpu.memory_space<vmem>>, %arg8: memref<128x128xf32, #tpu.memory_space<vmem>>) attributes {dimension_semantics = [#tpu.dimension_semantics<parallel>], iteration_bounds = array<i64: 1>, scalar_prefetch = 0 : i64, scratch_operands = 0 : i64, tpu.core_type = #tpu.core_type<tc>, window_params = [{transform_indices = @transform_0, window_bounds = array<i64: 128, 4>}, {transform_indices = @transform_1, window_bounds = array<i64: 128, 128>}, {transform_indices = @transform_2, window_bounds = array<i64: 128, 128>}, {pipeline_mode = #tpu.pipeline_mode<synchronous>, transform_indices = @transform_3, window_bounds = array<i64: 4, 512>}, {pipeline_mode = #tpu.pipeline_mode<synchronous>, transform_indices = @transform_4, window_bounds = array<i64: 128, 512>}, {pipeline_mode = #tpu.pipeline_mode<synchronous>, transform_indices = @transform_5, window_bounds = array<i64: 1, 512>}, {transform_indices = @transform_6, window_bounds = array<i64: 128, 128>}, {transform_indices = @transform_7, window_bounds = array<i64: 128, 128>}]} {
    %c0 = arith.constant 0 : index
    %c0_0 = arith.constant 0 : index
    %0 = vector.load %arg1[%c0, %c0_0] : memref<128x4xf32, #tpu.memory_space<vmem>>, vector<128x4xf32>
    %c0_1 = arith.constant 0 : index
    %c0_2 = arith.constant 0 : index
    %1 = vector.load %arg4[%c0_1, %c0_2] : memref<4x512xf32, #tpu.memory_space<vmem>>, vector<4x512xf32>
    %cst = arith.constant dense<0.000000e+00> : vector<128x512xf32>
    %2 = tpu.matmul %0, %1, %cst {dimension_numbers = #tpu.dot_dimension_numbers<[1], [0], [0], [1], [0, 0, 1, 1], [], []>} : vector<128x4xf32>, vector<4x512xf32>, vector<128x512xf32> -> vector<128x512xf32>
    %c0_3 = arith.constant 0 : index
    %c0_4 = arith.constant 0 : index
    %3 = vector.load %arg2[%c0_3, %c0_4] : memref<128x128xf32, #tpu.memory_space<vmem>>, vector<128x128xf32>
    %c0_5 = arith.constant 0 : index
    %c0_6 = arith.constant 0 : index
    %4 = vector.load %arg5[%c0_5, %c0_6] : memref<128x512xf32, #tpu.memory_space<vmem>>, vector<128x512xf32>
    %cst_7 = arith.constant dense<0.000000e+00> : vector<128x512xf32>
    %5 = tpu.matmul %3, %4, %cst_7 {dimension_numbers = #tpu.dot_dimension_numbers<[1], [0], [0], [1], [0, 0, 1, 1], [], []>} : vector<128x128xf32>, vector<128x512xf32>, vector<128x512xf32> -> vector<128x512xf32>
    %6 = arith.addf %2, %5 : vector<128x512xf32>
    %c0_8 = arith.constant 0 : index
    %c0_9 = arith.constant 0 : index
    %7 = vector.load %arg6[%c0_8, %c0_9] : memref<1x512xf32, #tpu.memory_space<vmem>>, vector<1x512xf32>
    %8 = vector.broadcast %7 : vector<1x512xf32> to vector<128x512xf32>
    %9 = arith.addf %6, %8 : vector<128x512xf32>
    %10 = vector.extract_strided_slice %9 {offsets = [0, 0], sizes = [128, 128], strides = [1, 1]} : vector<128x512xf32> to vector<128x128xf32>
    %11 = arith.negf %10 : vector<128x128xf32>
    %12 = math.exp %11 : vector<128x128xf32>
    %cst_10 = arith.constant 1.000000e+00 : f32
    %13 = vector.broadcast %cst_10 : f32 to vector<128x128xf32>
    %14 = arith.addf %13, %12 : vector<128x128xf32>
    %15 = arith.divf %13, %14 : vector<128x128xf32>
    %16 = vector.extract_strided_slice %9 {offsets = [0, 128], sizes = [128, 128], strides = [1, 1]} : vector<128x512xf32> to vector<128x128xf32>
    %17 = arith.negf %16 : vector<128x128xf32>
    %18 = math.exp %17 : vector<128x128xf32>
    %cst_11 = arith.constant 1.000000e+00 : f32
    %19 = vector.broadcast %cst_11 : f32 to vector<128x128xf32>
    %20 = arith.addf %19, %18 : vector<128x128xf32>
    %21 = arith.divf %19, %20 : vector<128x128xf32>
    %22 = vector.extract_strided_slice %9 {offsets = [0, 256], sizes = [128, 128], strides = [1, 1]} : vector<128x512xf32> to vector<128x128xf32>
    %23 = math.tanh %22 : vector<128x128xf32>
    %24 = vector.extract_strided_slice %9 {offsets = [0, 384], sizes = [128, 128], strides = [1, 1]} : vector<128x512xf32> to vector<128x128xf32>
    %25 = arith.negf %24 : vector<128x128xf32>
    %26 = math.exp %25 : vector<128x128xf32>
    %cst_12 = arith.constant 1.000000e+00 : f32
    %27 = vector.broadcast %cst_12 : f32 to vector<128x128xf32>
    %28 = arith.addf %27, %26 : vector<128x128xf32>
    %29 = arith.divf %27, %28 : vector<128x128xf32>
    %c0_13 = arith.constant 0 : index
    %c0_14 = arith.constant 0 : index
    %30 = vector.load %arg3[%c0_13, %c0_14] : memref<128x128xf32, #tpu.memory_space<vmem>>, vector<128x128xf32>
    %31 = arith.mulf %21, %30 : vector<128x128xf32>
    %32 = arith.mulf %15, %23 : vector<128x128xf32>
    %33 = arith.addf %31, %32 : vector<128x128xf32>
    %34 = math.tanh %33 : vector<128x128xf32>
    %35 = arith.mulf %29, %34 : vector<128x128xf32>
    %c0_15 = arith.constant 0 : index
    %c0_16 = arith.constant 0 : index
    %36 = vector.load %arg8[%c0_15, %c0_16] : memref<128x128xf32, #tpu.memory_space<vmem>>, vector<128x128xf32>
    tpu.vector_store %arg8[%c0_15, %c0_16], %33 {strides = array<i32>} : memref<128x128xf32, #tpu.memory_space<vmem>>, vector<128x128xf32>,
    %c0_17 = arith.constant 0 : index
    %c0_18 = arith.constant 0 : index
    %37 = vector.load %arg7[%c0_17, %c0_18] : memref<128x128xf32, #tpu.memory_space<vmem>>, vector<128x128xf32>
    tpu.vector_store %arg7[%c0_17, %c0_18], %35 {strides = array<i32>} : memref<128x128xf32, #tpu.memory_space<vmem>>, vector<128x128xf32>,
    return
  }
  func.func @transform_0(%arg0: i32) -> (i32, i32) {
    %c0_i32 = arith.constant 0 : i32
    %c0_i32_0 = arith.constant 0 : i32
    return %arg0, %c0_i32 : i32, i32
  }
  func.func @transform_1(%arg0: i32) -> (i32, i32) {
    %c0_i32 = arith.constant 0 : i32
    %c0_i32_0 = arith.constant 0 : i32
    return %arg0, %c0_i32 : i32, i32
  }
  func.func @transform_2(%arg0: i32) -> (i32, i32) {
    %c0_i32 = arith.constant 0 : i32
    %c0_i32_0 = arith.constant 0 : i32
    return %arg0, %c0_i32 : i32, i32
  }
  func.func @transform_3(%arg0: i32) -> (i32, i32) {
    %c0_i32 = arith.constant 0 : i32
    %c0_i32_0 = arith.constant 0 : i32
    %c0_i32_1 = arith.constant 0 : i32
    return %c0_i32, %c0_i32_0 : i32, i32
  }
  func.func @transform_4(%arg0: i32) -> (i32, i32) {
    %c0_i32 = arith.constant 0 : i32
    %c0_i32_0 = arith.constant 0 : i32
    %c0_i32_1 = arith.constant 0 : i32
    return %c0_i32, %c0_i32_0 : i32, i32
  }
  func.func @transform_5(%arg0: i32) -> (i32, i32) {
    %c0_i32 = arith.constant 0 : i32
    %c0_i32_0 = arith.constant 0 : i32
    %c0_i32_1 = arith.constant 0 : i32
    return %c0_i32, %c0_i32_0 : i32, i32
  }
  func.func @transform_6(%arg0: i32) -> (i32, i32) {
    %c0_i32 = arith.constant 0 : i32
    %c0_i32_0 = arith.constant 0 : i32
    return %arg0, %c0_i32 : i32, i32
  }
  func.func @transform_7(%arg0: i32) -> (i32, i32) {
    %c0_i32 = arith.constant 0 : i32
    %c0_i32_0 = arith.constant 0 : i32
    return %arg0, %c0_i32 : i32, i32
  }
}

</mosaic_0001>

<bundles_post_ra>
// kernel: shortcut_forward.1
= control target key start
LH: loop header
LB: loop body
LE: loop exit
PB: predicated region body
PF: predicated region fallthrough
CT: control target
= control target key end

     0   :  { %v1826_v3 = vmov 0.0   ;;  %vm498_vm0 = vcmask 1043456   ;;  %vm449_vm1 = vcmask 31744   ;;  %s2602_s4 = inlined_call_operand.vmem [shape: f32[128,512], index: 4, kind: input, shape index: {}]   ;;  %s2603_s3 = inlined_call_operand.vmem [shape: f32[4,512], index: 3, kind: input, shape index: {}]   ;;  %s2604_s1 = inlined_call_operand.vmem [shape: f32[128,128], index: 1, kind: input, shape index: {}, may-alias: {1,2}]   ;;  %s2605_s0 = inlined_call_operand.vmem [shape: f32[128,4], index: 0, kind: input, shape index: {}]   ;;  %s2606_s5 = inlined_call_operand.vmem [shape: f32[1,512], index: 5, kind: input, shape index: {}]   ;;  %s2607_s2 = inlined_call_operand.vmem [shape: f32[128,128], index: 2, kind: input, shape index: {}, may-alias: {1,2}]   ;;  %s2608_s7 = inlined_call_operand.vmem [shape: f32[128,128], index: 7, kind: output, shape index: {1}]   ;;  %s2609_s6 = inlined_call_operand.vmem [shape: f32[128,128], index: 6, kind: output, shape index: {0}]  }
   0x1   :  { %v60_v0 = vld [vmem:[%s2602_s4 + $0x8] sm:$0xff]  ;;  %v62_v2 = vld [vmem:[%s2602_s4 + $0x18] sm:$0xff]  ;;  %187 = vmatprep.mubr.f32.mxu0 %v1826_v3  ;;  %348 = vmatprep.mubr.f32.mxu1 %v1826_v3  ;;  %v59_v6 = vld [vmem:[%s2602_s4] sm:$0xff] }
   0x2   :  { %v64_v1 = vld [vmem:[%s2602_s4 + $0x28] sm:$0xff]  ;;  %v66_v5 = vld [vmem:[%s2602_s4 + $0x38] sm:$0xff]  ;;  %v63_v7 = vld [vmem:[%s2602_s4 + $0x20] sm:$0xff] }
   0x3   :  { %v1439_v4 = vpack.c.bf16 %v64_v1, %v60_v0  ;;  %v1471_v8 = vpack.c.bf16 %v66_v5, %v62_v2  ;;  %v1441_v9 = vpack.c.bf16 %v63_v7, %v59_v6  ;;  %v61_v10 = vld [vmem:[%s2602_s4 + $0x10] sm:$0xff]  ;;  %v68_v12 = vld [vmem:[%s2602_s4 + $0x48] sm:$0xff]  ;;  %v70_v15 = vld [vmem:[%s2602_s4 + $0x58] sm:$0xff] }
   0x4   :  { %v65_v11 = vld [vmem:[%s2602_s4 + $0x30] sm:$0xff]  ;;  %v72_v14 = vld [vmem:[%s2602_s4 + $0x68] sm:$0xff]  ;;  %v74_v16 = vld [vmem:[%s2602_s4 + $0x78] sm:$0xff] }
   0x5   :  { %1440 = vmatprep.subr.bf16.mxu0 %v1439_v4  ;;  %v1473_v13 = vpack.c.bf16 %v65_v11, %v61_v10  ;;  %1472 = vmatprep.subr.bf16.mxu1 %v1471_v8  ;;  %v1443_v17 = vpack.c.bf16 %v72_v14, %v68_v12  ;;  %v1475_v18 = vpack.c.bf16 %v74_v16, %v70_v15  ;;  %v67_v19 = vld [vmem:[%s2602_s4 + $0x40] sm:$0xff]  ;;  %v69_v21 = vld [vmem:[%s2602_s4 + $0x50] sm:$0xff]  ;;  %v76_v24 = vld [vmem:[%s2602_s4 + $0x88] sm:$0xff] }
   0x6   :  { %1442 = vmatpush1.bf16.msra.mxu0 %v1441_v9  ;;  %v71_v20 = vld [vmem:[%s2602_s4 + $0x60] sm:$0xff]  ;;  %v73_v23 = vld [vmem:[%s2602_s4 + $0x70] sm:$0xff]  ;;  %v80_v25 = vld [vmem:[%s2602_s4 + $0xa8] sm:$0xff] }
   0x7   :  { %1474 = vmatpush1.bf16.msra.mxu1 %v1473_v13  ;;  %v1445_v22 = vpack.c.bf16 %v71_v20, %v67_v19  ;;  %1444 = vmatprep.subr.bf16.mxu0 %v1443_v17  ;;  %v1477_v26 = vpack.c.bf16 %v73_v23, %v69_v21  ;;  %v1447_v27 = vpack.c.bf16 %v80_v25, %v76_v24  ;;  %v78_v28 = vld [vmem:[%s2602_s4 + $0x98] sm:$0xff]  ;;  %v75_v30 = vld [vmem:[%s2602_s4 + $0x80] sm:$0xff]  ;;  %v77_v33 = vld [vmem:[%s2602_s4 + $0x90] sm:$0xff] }
   0x8   :  { %1476 = vmatprep.subr.bf16.mxu1 %v1475_v18  ;;  %v82_v29 = vld [vmem:[%s2602_s4 + $0xb8] sm:$0xff]  ;;  %v79_v32 = vld [vmem:[%s2602_s4 + $0xa0] sm:$0xff]  ;;  %v81_v34 = vld [vmem:[%s2602_s4 + $0xb0] sm:$0xff] }
   0x9   :  { %v1479_v31 = vpack.c.bf16 %v82_v29, %v78_v28  ;;  %v1449_v35 = vpack.c.bf16 %v79_v32, %v75_v30  ;;  %v84_v36 = vld [vmem:[%s2602_s4 + $0xc8] sm:$0xff]  ;;  %v86_v38 = vld [vmem:[%s2602_s4 + $0xd8] sm:$0xff]  ;;  %v1481_v39 = vpack.c.bf16 %v81_v34, %v77_v33  ;;  %v83_v42 = vld [vmem:[%s2602_s4 + $0xc0] sm:$0xff] }
   0xa   :  { %1446 = vmatpush1.bf16.msra.mxu0 %v1445_v22  ;;  %v88_v37 = vld [vmem:[%s2602_s4 + $0xe8] sm:$0xff]  ;;  %v90_v41 = vld [vmem:[%s2602_s4 + $0xf8] sm:$0xff]  ;;  %v87_v43 = vld [vmem:[%s2602_s4 + $0xe0] sm:$0xff] }
   0xb   :  { %1478 = vmatpush1.bf16.msra.mxu1 %v1477_v26  ;;  %1448 = vmatprep.subr.bf16.mxu0 %v1447_v27  ;;  %v1451_v40 = vpack.c.bf16 %v88_v37, %v84_v36  ;;  %v1483_v44 = vpack.c.bf16 %v90_v41, %v86_v38  ;;  %v85_v45 = vld [vmem:[%s2602_s4 + $0xd0] sm:$0xff]  ;;  %v92_v47 = vld [vmem:[%s2602_s4 + $0x108] sm:$0xff]  ;;  %v94_v49 = vld [vmem:[%s2602_s4 + $0x118] sm:$0xff]  ;;  %v1453_v51 = vpack.c.bf16 %v87_v43, %v83_v42 }
   0xc   :  { %1480 = vmatprep.subr.bf16.mxu1 %v1479_v31  ;;  %v89_v46 = vld [vmem:[%s2602_s4 + $0xf0] sm:$0xff]  ;;  %v96_v48 = vld [vmem:[%s2602_s4 + $0x128] sm:$0xff]  ;;  %v98_v50 = vld [vmem:[%s2602_s4 + $0x138] sm:$0xff] }
   0xd   :  { %v1485_v52 = vpack.c.bf16 %v89_v46, %v85_v45  ;;  %v1455_v53 = vpack.c.bf16 %v96_v48, %v92_v47  ;;  %v91_v54 = vld [vmem:[%s2602_s4 + $0x100] sm:$0xff]  ;;  %v93_v56 = vld [vmem:[%s2602_s4 + $0x110] sm:$0xff]  ;;  %v1487_v57 = vpack.c.bf16 %v98_v50, %v94_v49  ;;  %v100_v59 = vld [vmem:[%s2602_s4 + $0x148] sm:$0xff] }
   0xe   :  { %1450 = vmatpush1.bf16.msra.mxu0 %v1449_v35  ;;  %v95_v55 = vld [vmem:[%s2602_s4 + $0x120] sm:$0xff]  ;;  %v97_v58 = vld [vmem:[%s2602_s4 + $0x130] sm:$0xff]  ;;  %v104_v60 = vld [vmem:[%s2602_s4 + $0x168] sm:$0xff] }
   0xf   :  { %1482 = vmatpush1.bf16.msra.mxu1 %v1481_v39  ;;  %1452 = vmatprep.subr.bf16.mxu0 %v1451_v40  ;;  %v102_v61 = vld [vmem:[%s2602_s4 + $0x158] sm:$0xff]  ;;  %v1457_v63 = vpack.c.bf16 %v95_v55, %v91_v54  ;;  %v1489_v0 = vpack.c.bf16 %v97_v58, %v93_v56  ;;  %v1459_v1 = vpack.c.bf16 %v104_v60, %v100_v59  ;;  %v99_v2 = vld [vmem:[%s2602_s4 + $0x140] sm:$0xff]  ;;  %v101_v5 = vld [vmem:[%s2602_s4 + $0x150] sm:$0xff] }
  0x10   :  { %1484 = vmatprep.subr.bf16.mxu1 %v1483_v44  ;;  %v106_v62 = vld [vmem:[%s2602_s4 + $0x178] sm:$0xff]  ;;  %v103_v4 = vld [vmem:[%s2602_s4 + $0x160] sm:$0xff]  ;;  %v105_v7 = vld [vmem:[%s2602_s4 + $0x170] sm:$0xff] }
  0x11   :  { %v1491_v6 = vpack.c.bf16 %v106_v62, %v102_v61  ;;  %v108_v8 = vld [vmem:[%s2602_s4 + $0x188] sm:$0xff]  ;;  %v110_v10 = vld [vmem:[%s2602_s4 + $0x198] sm:$0xff]  ;;  %v1461_v12 = vpack.c.bf16 %v103_v4, %v99_v2  ;;  %v1493_v13 = vpack.c.bf16 %v105_v7, %v101_v5  ;;  %v107_v15 = vld [vmem:[%s2602_s4 + $0x180] sm:$0xff]  ;;  %v831_v7 = vlaneseq }
  0x12   :  { %1454 = vmatpush1.bf16.msra.mxu0 %v1453_v51  ;;  %v112_v9 = vld [vmem:[%s2602_s4 + $0x1a8] sm:$0xff]  ;;  %v114_v11 = vld [vmem:[%s2602_s4 + $0x1b8] sm:$0xff]  ;;  %v111_v16 = vld [vmem:[%s2602_s4 + $0x1a0] sm:$0xff] }
  0x13   :  { %1486 = vmatpush1.bf16.msra.mxu1 %v1485_v52  ;;  %1456 = vmatprep.subr.bf16.mxu0 %v1455_v53  ;;  %v1463_v14 = vpack.c.bf16 %v112_v9, %v108_v8  ;;  %v109_v17 = vld [vmem:[%s2602_s4 + $0x190] sm:$0xff]  ;;  %v1495_v18 = vpack.c.bf16 %v114_v11, %v110_v10  ;;  %v116_v20 = vld [vmem:[%s2602_s4 + $0x1c8] sm:$0xff]  ;;  %v118_v22 = vld [vmem:[%s2602_s4 + $0x1d8] sm:$0xff]  ;;  %v1465_v24 = vpack.c.bf16 %v111_v16, %v107_v15  ;;  %v832_v8 = vshrl.u32 %v831_v7, 7 }
  0x14   :  { %1488 = vmatprep.subr.bf16.mxu1 %v1487_v57  ;;  %v113_v19 = vld [vmem:[%s2602_s4 + $0x1b0] sm:$0xff]  ;;  %v120_v21 = vld [vmem:[%s2602_s4 + $0x1e8] sm:$0xff]  ;;  %v122_v23 = vld [vmem:[%s2602_s4 + $0x1f8] sm:$0xff] }
  0x15   :  { %v1497_v25 = vpack.c.bf16 %v113_v19, %v109_v17  ;;  %v1467_v26 = vpack.c.bf16 %v120_v21, %v116_v20  ;;  %v115_v27 = vld [vmem:[%s2602_s4 + $0x1c0] sm:$0xff]  ;;  %v1499_v29 = vpack.c.bf16 %v122_v23, %v118_v22  ;;  %v117_v30 = vld [vmem:[%s2602_s4 + $0x1d0] sm:$0xff]  ;;  %v42_v33 = vld [vmem:[%s2603_s3 + $0x8] sm:$0xff]  ;;  %v833_v9 = vsub.s32 0, %v832_v8 }
  0x16   :  { %1458 = vmatpush1.bf16.msra.mxu0 %v1457_v63  ;;  %v119_v28 = vld [vmem:[%s2602_s4 + $0x1e0] sm:$0xff]  ;;  %v121_v31 = vld [vmem:[%s2602_s4 + $0x1f0] sm:$0xff]  ;;  %v448_v37 = vcombine.high %v42_v33, %v42_v33  ;;  %v44_v39 = vld [vmem:[%s2604_s1 + $0x8] sm:$0xff]  ;;  %v837_v11 = vsub.s32 1, %v832_v8  ;;  %v841_v15 = vsub.s32 2, %v832_v8 }
  0x17   :  { %1490 = vmatpush1.bf16.msra.mxu1 %v1489_v0  ;;  %1460 = vmatprep.subr.bf16.mxu0 %v1459_v1  ;;  %v41_v32 = vld [vmem:[%s2603_s3] sm:$0xff]  ;;  %v1469_v34 = vpack.c.bf16 %v119_v28, %v115_v27  ;;  %v1501_v35 = vpack.c.bf16 %v121_v31, %v117_v30  ;;  %v45_v40 = vld [vmem:[%s2604_s1 + $0x10] sm:$0xff]  ;;  %v46_v41 = vld [vmem:[%s2604_s1 + $0x18] sm:$0xff] }
  0x18   :  { %1492 = vmatprep.subr.bf16.mxu1 %v1491_v6  ;;  %v447_v36 = vcombine.high %v41_v32, %v41_v32  ;;  %v43_v38 = vld [vmem:[%s2604_s1] sm:$0xff]  ;;  %v48_v43 = vld [vmem:[%s2604_s1 + $0x28] sm:$0xff]  ;;  %v49_v44 = vld [vmem:[%s2604_s1 + $0x30] sm:$0xff] }
  0x19   :  { %v47_v42 = vld [vmem:[%s2604_s1 + $0x20] sm:$0xff]  ;;  %v50_v45 = vld [vmem:[%s2604_s1 + $0x38] sm:$0xff]  ;;  %v52_v47 = vld [vmem:[%s2604_s1 + $0x48] sm:$0xff] }
  0x1a   :  { %1462 = vmatpush1.bf16.msra.mxu0 %v1461_v12  ;;  %v51_v46 = vld [vmem:[%s2604_s1 + $0x40] sm:$0xff]  ;;  %v53_v48 = vld [vmem:[%s2604_s1 + $0x50] sm:$0xff]  ;;  %v54_v49 = vld [vmem:[%s2604_s1 + $0x58] sm:$0xff]  ;;  %v845_v12 = vsub.s32 3, %v832_v8 }
  0x1b   :  { %1494 = vmatpush1.bf16.msra.mxu1 %v1493_v13  ;;  %1464 = vmatprep.subr.bf16.mxu0 %v1463_v14  ;;  %v55_v50 = vld [vmem:[%s2604_s1 + $0x60] sm:$0xff]  ;;  %v56_v51 = vld [vmem:[%s2604_s1 + $0x68] sm:$0xff]  ;;  %v57_v52 = vld [vmem:[%s2604_s1 + $0x70] sm:$0xff] }
  0x1c   :  { %1496 = vmatprep.subr.bf16.mxu1 %v1495_v18  ;;  %v58_v53 = vld [vmem:[%s2604_s1 + $0x78] sm:$0xff]  ;;  %v25_v54 = vld [vmem:[%s2605_s0] sm:$0xff]  ;;  %v26_v55 = vld [vmem:[%s2605_s0 + $0x8] sm:$0xff] }
  0x1d   :  { %v27_v56 = vld [vmem:[%s2605_s0 + $0x10] sm:$0xff]  ;;  %v28_v57 = vld [vmem:[%s2605_s0 + $0x18] sm:$0xff]  ;;  %v29_v58 = vld [vmem:[%s2605_s0 + $0x20] sm:$0xff] }
  0x1e   :  { %1466 = vmatpush1.bf16.msra.mxu0 %v1465_v24  ;;  %v30_v59 = vld [vmem:[%s2605_s0 + $0x28] sm:$0xff]  ;;  %v31_v60 = vld [vmem:[%s2605_s0 + $0x30] sm:$0xff]  ;;  %v32_v61 = vld [vmem:[%s2605_s0 + $0x38] sm:$0xff] }
  0x1f   :  { %1498 = vmatpush1.bf16.msra.mxu1 %v1497_v25  ;;  %1468 = vmatprep.subr.bf16.mxu0 %v1467_v26  ;;  %v33_v62 = vld [vmem:[%s2605_s0 + $0x40] sm:$0xff]  ;;  %v34_v63 = vld [vmem:[%s2605_s0 + $0x48] sm:$0xff]  ;;  %v35_v0 = vld [vmem:[%s2605_s0 + $0x50] sm:$0xff] }
  0x20   :  { %1500 = vmatprep.subr.bf16.mxu1 %v1499_v29  ;;  %v36_v1 = vld [vmem:[%s2605_s0 + $0x58] sm:$0xff]  ;;  %v37_v2 = vld [vmem:[%s2605_s0 + $0x60] sm:$0xff]  ;;  %v38_v4 = vld [vmem:[%s2605_s0 + $0x68] sm:$0xff] }
  0x21   :  { %v39_v5 = vld [vmem:[%s2605_s0 + $0x70] sm:$0xff]  ;;  %v40_v6 = vld [vmem:[%s2605_s0 + $0x78] sm:$0xff]  ;;  %v829_v10 = vld [vmem:[%s2606_s5] sm:$0xf] }
  0x22   :  { %1470 = vmatpush1.bf16.msra.mxu0 %v1469_v34  ;;  %v2260_v13 = vrot.slane %v829_v10, %v833_v9  ;;  %v2262_v14 = vrot.slane %v829_v10, %v837_v11  ;;  %v2264_v16 = vrot.slane %v829_v10, %v845_v12  ;;  %v2268_v23 = vrot.slane %v829_v10, %v841_v15 }
  0x23   :  { %1502 = vmatpush1.bf16.msra.mxu1 %v1501_v35  ;;  %1355 = vmatprep.subr.msk.mxu0 %vm498_vm0, %v447_v36 }
  0x24   :  { %1373 = vmatprep.subr.msk.mxu1 %vm498_vm0, %v448_v37 }
  0x25   :  { %188 = vmatmul.mubr.f32.vlgmr.msra.gmra.mrb[0].mxu0 %v43_v38 }
  0x26   :  { %349 = vmatmul.mubr.f32.vlgmr.msra.gmra.mrb[0].mxu1 %v43_v38  ;;  %1356 = vmatpush1.msk.msra.mxu0 %vm498_vm0, %v41_v32 }
  0x27   :  { %193 = vmatprep.mubr.f32.mxu0 %v1826_v3  ;;  %354 = vmatprep.mubr.f32.mxu1 %v1826_v3 }
  0x28   :  { %1374 = vmatpush1.msk.msra.mxu1 %vm498_vm0, %v42_v33 }
  0x29   :  { %194 = vmatmul.mubr.f32.gmra.mrb[2].mxu0 %v44_v39 }
  0x2a   :  { %355 = vmatmul.mubr.f32.gmra.mrb[2].mxu1 %v44_v39  ;;  %199 = vmatprep.mubr.f32.mxu0 %v1826_v3 }
  0x2b   :  { %360 = vmatprep.mubr.f32.mxu1 %v1826_v3 }
  0x2d   :  { %200 = vmatmul.mubr.f32.gmra.mrb[4].mxu0 %v45_v40 }
  0x2e   :  { %361 = vmatmul.mubr.f32.gmra.mrb[4].mxu1 %v45_v40  ;;  %205 = vmatprep.mubr.f32.mxu0 %v1826_v3 }
  0x2f   :  { %366 = vmatprep.mubr.f32.mxu1 %v1826_v3 }
  0x31   :  { %206 = vmatmul.mubr.f32.gmra.mrb[6].mxu0 %v46_v41 }
  0x32   :  { %367 = vmatmul.mubr.f32.gmra.mrb[6].mxu1 %v46_v41  ;;  %211 = vmatprep.mubr.f32.mxu0 %v1826_v3 }
  0x33   :  { %372 = vmatprep.mubr.f32.mxu1 %v1826_v3 }
  0x35   :  { %212 = vmatmul.mubr.f32.gmra.mrb[8].mxu0 %v47_v42 }
  0x36   :  { %373 = vmatmul.mubr.f32.gmra.mrb[8].mxu1 %v47_v42  ;;  %217 = vmatprep.mubr.f32.mxu0 %v1826_v3 }
  0x37   :  { %378 = vmatprep.mubr.f32.mxu1 %v1826_v3 }
  0x39   :  { %218 = vmatmul.mubr.f32.gmra.mrb[10].mxu0 %v48_v43 }
  0x3a   :  { %379 = vmatmul.mubr.f32.gmra.mrb[10].mxu1 %v48_v43  ;;  %223 = vmatprep.mubr.f32.mxu0 %v1826_v3 }
  0x3b   :  { %384 = vmatprep.mubr.f32.mxu1 %v1826_v3 }
  0x3d   :  { %224 = vmatmul.mubr.f32.gmra.mrb[12].mxu0 %v49_v44 }
  0x3e   :  { %385 = vmatmul.mubr.f32.gmra.mrb[12].mxu1 %v49_v44  ;;  %229 = vmatprep.mubr.f32.mxu0 %v1826_v3 }
  0x3f   :  { %390 = vmatprep.mubr.f32.mxu1 %v1826_v3 }
  0x41   :  { %230 = vmatmul.mubr.f32.gmra.mrb[14].mxu0 %v50_v45 }
  0x42   :  { %391 = vmatmul.mubr.f32.gmra.mrb[14].mxu1 %v50_v45  ;;  %235 = vmatprep.mubr.f32.mxu0 %v1826_v3 }
  0x43   :  { %396 = vmatprep.mubr.f32.mxu1 %v1826_v3 }
  0x45   :  { %236 = vmatmul.mubr.f32.gmra.mrb[16].mxu0 %v51_v46 }
  0x46   :  { %397 = vmatmul.mubr.f32.gmra.mrb[16].mxu1 %v51_v46  ;;  %241 = vmatprep.mubr.f32.mxu0 %v1826_v3 }
  0x47   :  { %402 = vmatprep.mubr.f32.mxu1 %v1826_v3 }
  0x49   :  { %242 = vmatmul.mubr.f32.gmra.mrb[18].mxu0 %v52_v47 }
  0x4a   :  { %403 = vmatmul.mubr.f32.gmra.mrb[18].mxu1 %v52_v47  ;;  %247 = vmatprep.mubr.f32.mxu0 %v1826_v3 }
  0x4b   :  { %408 = vmatprep.mubr.f32.mxu1 %v1826_v3 }
  0x4d   :  { %248 = vmatmul.mubr.f32.gmra.mrb[20].mxu0 %v53_v48 }
  0x4e   :  { %409 = vmatmul.mubr.f32.gmra.mrb[20].mxu1 %v53_v48  ;;  %253 = vmatprep.mubr.f32.mxu0 %v1826_v3 }
  0x4f   :  { %414 = vmatprep.mubr.f32.mxu1 %v1826_v3 }
  0x51   :  { %254 = vmatmul.mubr.f32.gmra.mrb[22].mxu0 %v54_v49 }
  0x52   :  { %415 = vmatmul.mubr.f32.gmra.mrb[22].mxu1 %v54_v49  ;;  %259 = vmatprep.mubr.f32.mxu0 %v1826_v3 }
  0x53   :  { %420 = vmatprep.mubr.f32.mxu1 %v1826_v3 }
  0x55   :  { %260 = vmatmul.mubr.f32.gmra.mrb[24].mxu0 %v55_v50 }
  0x56   :  { %421 = vmatmul.mubr.f32.gmra.mrb[24].mxu1 %v55_v50  ;;  %265 = vmatprep.mubr.f32.mxu0 %v1826_v3 }
  0x57   :  { %426 = vmatprep.mubr.f32.mxu1 %v1826_v3 }
  0x59   :  { %266 = vmatmul.mubr.f32.gmra.mrb[26].mxu0 %v56_v51 }
  0x5a   :  { %427 = vmatmul.mubr.f32.gmra.mrb[26].mxu1 %v56_v51  ;;  %271 = vmatprep.mubr.f32.mxu0 %v1826_v3 }
  0x5b   :  { %432 = vmatprep.mubr.f32.mxu1 %v1826_v3 }
  0x5d   :  { %272 = vmatmul.mubr.f32.gmra.mrb[28].mxu0 %v57_v52 }
  0x5e   :  { %433 = vmatmul.mubr.f32.gmra.mrb[28].mxu1 %v57_v52  ;;  %277 = vmatprep.mubr.f32.mxu0 %v1826_v3 }
  0x5f   :  { %438 = vmatprep.mubr.f32.mxu1 %v1826_v3 }
  0x61   :  { %278 = vmatmul.mubr.f32.gmra.mrb[30].mxu0 %v58_v53 }
  0x62   :  { %439 = vmatmul.mubr.f32.gmra.mrb[30].mxu1 %v58_v53  ;;  %571 = vmatprep.mubr.f32.mxu0 %v1826_v3 }
  0x63   :  { %732 = vmatprep.mubr.f32.mxu1 %v1826_v3 }
  0x65   :  { %1357 = vmatmul.mubr.msk.f32.vlgmr.msra.gmra.mrb[0].mxu0 %vm449_vm1, %v25_v54 }
  0x66   :  { %1375 = vmatmul.mubr.msk.f32.vlgmr.msra.gmra.mrb[0].mxu1 %vm449_vm1, %v25_v54  ;;  %577 = vmatprep.mubr.f32.mxu0 %v1826_v3 }
  0x67   :  { %738 = vmatprep.mubr.f32.mxu1 %v1826_v3 }
  0x69   :  { %1358 = vmatmul.mubr.msk.f32.gmra.mrb[2].mxu0 %vm449_vm1, %v26_v55 }
  0x6a   :  { %1376 = vmatmul.mubr.msk.f32.gmra.mrb[2].mxu1 %vm449_vm1, %v26_v55  ;;  %583 = vmatprep.mubr.f32.mxu0 %v1826_v3 }
  0x6b   :  { %744 = vmatprep.mubr.f32.mxu1 %v1826_v3 }
  0x6d   :  { %1359 = vmatmul.mubr.msk.f32.gmra.mrb[4].mxu0 %vm449_vm1, %v27_v56 }
  0x6e   :  { %1377 = vmatmul.mubr.msk.f32.gmra.mrb[4].mxu1 %vm449_vm1, %v27_v56  ;;  %589 = vmatprep.mubr.f32.mxu0 %v1826_v3 }
  0x6f   :  { %750 = vmatprep.mubr.f32.mxu1 %v1826_v3 }
  0x71   :  { %1360 = vmatmul.mubr.msk.f32.gmra.mrb[6].mxu0 %vm449_vm1, %v28_v57 }
  0x72   :  { %1378 = vmatmul.mubr.msk.f32.gmra.mrb[6].mxu1 %vm449_vm1, %v28_v57  ;;  %595 = vmatprep.mubr.f32.mxu0 %v1826_v3 }
  0x73   :  { %756 = vmatprep.mubr.f32.mxu1 %v1826_v3 }
  0x75   :  { %1361 = vmatmul.mubr.msk.f32.gmra.mrb[8].mxu0 %vm449_vm1, %v29_v58 }
  0x76   :  { %1379 = vmatmul.mubr.msk.f32.gmra.mrb[8].mxu1 %vm449_vm1, %v29_v58  ;;  %601 = vmatprep.mubr.f32.mxu0 %v1826_v3 }
  0x77   :  { %762 = vmatprep.mubr.f32.mxu1 %v1826_v3 }
  0x79   :  { %1362 = vmatmul.mubr.msk.f32.gmra.mrb[10].mxu0 %vm449_vm1, %v30_v59 }
  0x7a   :  { %1380 = vmatmul.mubr.msk.f32.gmra.mrb[10].mxu1 %vm449_vm1, %v30_v59  ;;  %607 = vmatprep.mubr.f32.mxu0 %v1826_v3 }
  0x7b   :  { %768 = vmatprep.mubr.f32.mxu1 %v1826_v3 }
  0x7d   :  { %1363 = vmatmul.mubr.msk.f32.gmra.mrb[12].mxu0 %vm449_vm1, %v31_v60 }
  0x7e   :  { %1381 = vmatmul.mubr.msk.f32.gmra.mrb[12].mxu1 %vm449_vm1, %v31_v60  ;;  %613 = vmatprep.mubr.f32.mxu0 %v1826_v3 }
  0x7f   :  { %774 = vmatprep.mubr.f32.mxu1 %v1826_v3 }
  0x81   :  { %1364 = vmatmul.mubr.msk.f32.gmra.mrb[14].mxu0 %vm449_vm1, %v32_v61 }
  0x82   :  { %1382 = vmatmul.mubr.msk.f32.gmra.mrb[14].mxu1 %vm449_vm1, %v32_v61  ;;  %619 = vmatprep.mubr.f32.mxu0 %v1826_v3 }
  0x83   :  { %780 = vmatprep.mubr.f32.mxu1 %v1826_v3 }
  0x85   :  { %1365 = vmatmul.mubr.msk.f32.gmra.mrb[16].mxu0 %vm449_vm1, %v33_v62 }
  0x86   :  { %1383 = vmatmul.mubr.msk.f32.gmra.mrb[16].mxu1 %vm449_vm1, %v33_v62  ;;  %625 = vmatprep.mubr.f32.mxu0 %v1826_v3 }
  0x87   :  { %786 = vmatprep.mubr.f32.mxu1 %v1826_v3 }
  0x89   :  { %1366 = vmatmul.mubr.msk.f32.gmra.mrb[18].mxu0 %vm449_vm1, %v34_v63 }
  0x8a   :  { %1384 = vmatmul.mubr.msk.f32.gmra.mrb[18].mxu1 %vm449_vm1, %v34_v63  ;;  %631 = vmatprep.mubr.f32.mxu0 %v1826_v3 }
  0x8b   :  { %792 = vmatprep.mubr.f32.mxu1 %v1826_v3 }
  0x8d   :  { %1367 = vmatmul.mubr.msk.f32.gmra.mrb[20].mxu0 %vm449_vm1, %v35_v0 }
  0x8e   :  { %1385 = vmatmul.mubr.msk.f32.gmra.mrb[20].mxu1 %vm449_vm1, %v35_v0  ;;  %637 = vmatprep.mubr.f32.mxu0 %v1826_v3 }
  0x8f   :  { %798 = vmatprep.mubr.f32.mxu1 %v1826_v3 }
  0x91   :  { %1368 = vmatmul.mubr.msk.f32.gmra.mrb[22].mxu0 %vm449_vm1, %v36_v1 }
  0x92   :  { %1386 = vmatmul.mubr.msk.f32.gmra.mrb[22].mxu1 %vm449_vm1, %v36_v1  ;;  %643 = vmatprep.mubr.f32.mxu0 %v1826_v3 }
  0x93   :  { %804 = vmatprep.mubr.f32.mxu1 %v1826_v3 }
  0x95   :  { %1369 = vmatmul.mubr.msk.f32.gmra.mrb[24].mxu0 %vm449_vm1, %v37_v2 }
  0x96   :  { %1387 = vmatmul.mubr.msk.f32.gmra.mrb[24].mxu1 %vm449_vm1, %v37_v2  ;;  %649 = vmatprep.mubr.f32.mxu0 %v1826_v3 }
  0x97   :  { %810 = vmatprep.mubr.f32.mxu1 %v1826_v3 }
  0x99   :  { %1370 = vmatmul.mubr.msk.f32.gmra.mrb[26].mxu0 %vm449_vm1, %v38_v4 }
  0x9a   :  { %1388 = vmatmul.mubr.msk.f32.gmra.mrb[26].mxu1 %vm449_vm1, %v38_v4  ;;  %655 = vmatprep.mubr.f32.mxu0 %v1826_v3 }
  0x9b   :  { %816 = vmatprep.mubr.f32.mxu1 %v1826_v3 }
  0x9d   :  { %1371 = vmatmul.mubr.msk.f32.gmra.mrb[28].mxu0 %vm449_vm1, %v39_v5 }
  0x9e   :  { %1389 = vmatmul.mubr.msk.f32.gmra.mrb[28].mxu1 %vm449_vm1, %v39_v5  ;;  %661 = vmatprep.mubr.f32.mxu0 %v1826_v3 }
  0x9f   :  { %822 = vmatprep.mubr.f32.mxu1 %v1826_v3 }
  0xa1   :  { %1372 = vmatmul.mubr.msk.f32.gmra.mrb[30].mxu0 %vm449_vm1, %v40_v6 }
  0xa2   :  { %1390 = vmatmul.mubr.msk.f32.gmra.mrb[30].mxu1 %vm449_vm1, %v40_v6 }
 0x138   :  { %v573_v3 = vpop.f32.mrb[0].mxu0 }
 0x139   :  { %v851_v17 = vadd.f32 %v2260_v13, %v573_v3  ;;  %v734_v18 = vpop.f32.mrb[0].mxu1  ;;  %v575_v19 = vpop.f32.mrb[1].mxu0 }
 0x13a   :  { %v852_v20 = vadd.f32 %v2262_v14, %v575_v19  ;;  %v736_v21 = vpop.f32.mrb[1].mxu1  ;;  %v853_v33 = vadd.f32 %v2268_v23, %v734_v18 }
 0x13b   :  { %v1391_v22 = vmul.f32 -1.442695, %v851_v17  ;;  %v854_v24 = vadd.f32 %v2264_v16, %v736_v21 }
 0x13c   :  { %v1407_v25 = vmul.f32 -1.442695, %v852_v20  ;;  %v579_v26 = vpop.f32.mrb[2].mxu0 }
 0x13d   :  { %1570 = vpow2.f32 %v1391_v22  ;;  %v1423_v27 = vmul.f32 -1.442695, %v854_v24  ;;  %v855_v28 = vadd.f32 %v2260_v13, %v579_v26  ;;  %v740_v29 = vpop.f32.mrb[2].mxu1  ;;  %v581_v30 = vpop.f32.mrb[3].mxu0 }
 0x13e   :  { %1572 = vpow2.f32 %v1407_v25  ;;  %v856_v31 = vadd.f32 %v2262_v14, %v581_v30  ;;  %v742_v32 = vpop.f32.mrb[3].mxu1  ;;  %v857_v44 = vadd.f32 %v2268_v23, %v740_v29 }
 0x13f   :  { %v1392_v34 = vmul.f32 -1.442695, %v855_v28  ;;  %v858_v35 = vadd.f32 %v2264_v16, %v742_v32  ;;  %1574 = vpow2.f32 %v1423_v27 }
 0x140   :  { %v1408_v36 = vmul.f32 -1.442695, %v856_v31  ;;  %v585_v37 = vpop.f32.mrb[4].mxu0 }
 0x141   :  { %1576 = vpow2.f32 %v1392_v34  ;;  %v1424_v38 = vmul.f32 -1.442695, %v858_v35  ;;  %v859_v39 = vadd.f32 %v2260_v13, %v585_v37  ;;  %v746_v40 = vpop.f32.mrb[4].mxu1  ;;  %v587_v41 = vpop.f32.mrb[5].mxu0  ;;  %v1219_v35 = vld [vmem:[%s2607_s2] sm:$0xff] }
 0x142   :  { %1578 = vpow2.f32 %v1408_v36  ;;  %v860_v42 = vadd.f32 %v2262_v14, %v587_v41  ;;  %v748_v43 = vpop.f32.mrb[5].mxu1  ;;  %v861_v59 = vadd.f32 %v2268_v23, %v746_v40 }
 0x143   :  { %1580 = vtanh.f32 %v853_v33  ;;  %v1393_v45 = vmul.f32 -1.442695, %v859_v39  ;;  %v862_v46 = vadd.f32 %v2264_v16, %v748_v43 }
 0x144   :  { %1582 = vpow2.f32 %v1424_v38  ;;  %v1409_v47 = vmul.f32 -1.442695, %v860_v42  ;;  %v591_v48 = vpop.f32.mrb[6].mxu0 }
 0x145   :  { %1584 = vpow2.f32 %v1393_v45  ;;  %v1425_v49 = vmul.f32 -1.442695, %v862_v46  ;;  %v863_v50 = vadd.f32 %v2260_v13, %v591_v48  ;;  %v752_v51 = vpop.f32.mrb[6].mxu1  ;;  %v593_v52 = vpop.f32.mrb[7].mxu0 }
 0x146   :  { %1586 = vpow2.f32 %v1409_v47  ;;  %v864_v53 = vadd.f32 %v2262_v14, %v593_v52  ;;  %v754_v54 = vpop.f32.mrb[7].mxu1  ;;  %v865_v7 = vadd.f32 %v2268_v23, %v752_v51  ;;  %v1220_v51 = vld [vmem:[%s2607_s2 + $0x8] sm:$0xff] }
 0x147   :  { %v1571_v55 = vpop.eup %1570  ;;  %1588 = vtanh.f32 %v857_v44  ;;  %v1394_v56 = vmul.f32 -1.442695, %v863_v50  ;;  %v866_v8 = vadd.f32 %v2264_v16, %v754_v54 }
 0x148   :  { %v1573_v57 = vpop.eup %1572  ;;  %v963_v58 = vadd.f32 1.0, %v1571_v55  ;;  %1590 = vpow2.f32 %v1425_v49  ;;  %v597_v60 = vpop.f32.mrb[8].mxu0  ;;  %v1410_v62 = vmul.f32 -1.442695, %v864_v53 }
 0x149   :  { %v1059_v61 = vadd.f32 1.0, %v1573_v57  ;;  %1592 = vpow2.f32 %v1394_v56  ;;  %v2282_v63 = vpop.f32.mrb[8].mxu1  ;;  %v599_v0 = vpop.f32.mrb[9].mxu0  ;;  %v867_v15 = vadd.f32 %v2260_v13, %v597_v60  ;;  %v1426_v24 = vmul.f32 -1.442695, %v866_v8 }
 0x14a   :  { %v1575_v1 = vpop.eup %1574  ;;  %1594 = vrcp.f32 %v963_v58  ;;  %v760_v2 = vpop.f32.mrb[9].mxu1  ;;  %v868_v25 = vadd.f32 %v2262_v14, %v599_v0 }
 0x14b   :  { %v1577_v4 = vpop.eup %1576  ;;  %1596 = vrcp.f32 %v1059_v61  ;;  %v1171_v11 = vadd.f32 1.0, %v1575_v1  ;;  %v1395_v29 = vmul.f32 -1.442695, %v867_v15  ;;  %v870_v52 = vadd.f32 %v2264_v16, %v760_v2 }
 0x14c   :  { %v1579_v5 = vpop.eup %1578  ;;  %v964_v6 = vadd.f32 1.0, %v1577_v4  ;;  %1598 = vtanh.f32 %v861_v59  ;;  %v603_v9 = vpop.f32.mrb[10].mxu0  ;;  %v1411_v39 = vmul.f32 -1.442695, %v868_v25  ;;  %v869_v61 = vadd.f32 %v2268_v23, %v2282_v63 }
 0x14d   :  { %v1581_v10 = vpop.eup %1580  ;;  %v1060_v12 = vadd.f32 1.0, %v1579_v5  ;;  %1600 = vpow2.f32 %v1410_v62  ;;  %v2287_v3 = vpop.f32.mrb[10].mxu1  ;;  %v871_v40 = vadd.f32 %v2260_v13, %v603_v9  ;;  %v1427_v63 = vmul.f32 -1.442695, %v870_v52  ;;  %v1222_v52 = vld [vmem:[%s2607_s2 + $0x18] sm:$0xff] }
 0x14e   :  { %v605_v17 = vpop.f32.mrb[11].mxu0  ;;  %v1583_v18 = vpop.eup %1582  ;;  %1602 = vrcp.f32 %v964_v6  ;;  %v1221_v6 = vld [vmem:[%s2607_s2 + $0x10] sm:$0xff] }
 0x14f   :  { %v2289_v19 = vpop.f32.mrb[11].mxu1  ;;  %v1585_v20 = vpop.eup %1584  ;;  %1604 = vrcp.f32 %v1060_v12  ;;  %v1172_v36 = vadd.f32 1.0, %v1583_v18  ;;  %v872_v53 = vadd.f32 %v2262_v14, %v605_v17  ;;  %v1396_v57 = vmul.f32 -1.442695, %v871_v40 }
 0x150   :  { %v1587_v21 = vpop.eup %1586  ;;  %v965_v22 = vadd.f32 1.0, %v1585_v20  ;;  %1606 = vtanh.f32 %v865_v7  ;;  %v609_v26 = vpop.f32.mrb[12].mxu0  ;;  %v873_v17 = vadd.f32 %v2268_v23, %v2287_v3 }
 0x151   :  { %v1589_v27 = vpop.eup %1588  ;;  %1608 = vrcp.f32 %v1171_v11  ;;  %v1061_v28 = vadd.f32 1.0, %v1587_v21  ;;  %v2292_v30 = vpop.f32.mrb[12].mxu1  ;;  %v1412_v9 = vmul.f32 -1.442695, %v872_v53 }
 0x152   :  { %v2294_v31 = vpop.f32.mrb[13].mxu0  ;;  %v1591_v32 = vpop.eup %1590  ;;  %1610 = vrcp.f32 %v965_v22 }
 0x153   :  { %v2296_v33 = vpop.f32.mrb[13].mxu1  ;;  %v1593_v34 = vpop.eup %1592  ;;  %1612 = vrcp.f32 %v1061_v28  ;;  %v1173_v44 = vadd.f32 1.0, %v1591_v32  ;;  %v874_v28 = vadd.f32 %v2264_v16, %v2289_v19 }
 0x154   :  { %v1595_v37 = vpop.eup %1594  ;;  %v966_v38 = vadd.f32 1.0, %v1593_v34  ;;  %1614 = vpow2.f32 %v1426_v24  ;;  %v2302_v41 = vpop.f32.mrb[14].mxu0 }
 0x155   :  { %v1597_v42 = vpop.eup %1596  ;;  %v1251_v43 = vmul.f32 %v1595_v37, %v1581_v10  ;;  %1616 = vpow2.f32 %v1395_v29  ;;  %v2304_v45 = vpop.f32.mrb[14].mxu1  ;;  %v875_v10 = vadd.f32 %v2260_v13, %v609_v26  ;;  %v876_v29 = vadd.f32 %v2262_v14, %v2294_v31 }
 0x156   :  { %v2306_v46 = vpop.f32.mrb[15].mxu0  ;;  %v1599_v47 = vpop.eup %1598  ;;  %v1235_v48 = vmul.f32 %v1597_v42, %v1219_v35  ;;  %1618 = vrcp.f32 %v966_v38 }
 0x157   :  { %v2308_v49 = vpop.f32.mrb[15].mxu1  ;;  %v1601_v50 = vpop.eup %1600  ;;  %1620 = vrcp.f32 %v1172_v36  ;;  %v1397_v37 = vmul.f32 -1.442695, %v875_v10 }
 0x158   :  { %v1603_v54 = vpop.eup %1602  ;;  %v1267_v55 = vadd.f32 %v1251_v43, %v1235_v48  ;;  %v1062_v56 = vadd.f32 1.0, %v1601_v50  ;;  %1622 = vpow2.f32 %v1411_v39  ;;  %v2315_v58 = vpop.f32.mrb[16].mxu0 }
 0x159   :  { %v1605_v59 = vpop.eup %1604  ;;  %v1252_v60 = vmul.f32 %v1603_v54, %v1589_v27  ;;  %1624 = vrcp.f32 %v1173_v44  ;;  %v2319_v62 = vpop.f32.mrb[16].mxu1  ;;  %v1428_v54 = vmul.f32 -1.442695, %v874_v28 }
 0x15a   :  { %v2321_v0 = vpop.f32.mrb[17].mxu0  ;;  %v1607_v1 = vpop.eup %1606  ;;  %1626 = vtanh.f32 %v1267_v55  ;;  %1315 = vst [vmem:[%s2608_s7] sm:$0xff] %v1267_v55  ;;  %v1236_v2 = vmul.f32 %v1605_v59, %v1220_v51  ;;  %v879_v59 = vadd.f32 %v2260_v13, %v2302_v41 }
 0x15b   :  { %v2326_v4 = vpop.f32.mrb[17].mxu1  ;;  %v1609_v5 = vpop.eup %1608  ;;  %1628 = vrcp.f32 %v1062_v56 }
 0x15c   :  { %v1611_v7 = vpop.eup %1610  ;;  %v1268_v8 = vadd.f32 %v1252_v60, %v1236_v2  ;;  %1630 = vpow2.f32 %v1396_v57  ;;  %v627_v11 = vpop.f32.mrb[18].mxu0  ;;  %v1413_v57 = vmul.f32 -1.442695, %v876_v29 }
 0x15d   :  { %v1613_v12 = vpop.eup %1612  ;;  %v1253_v15 = vmul.f32 %v1611_v7, %v1599_v47  ;;  %1632 = vtanh.f32 %v869_v61  ;;  %v2335_v18 = vadd.f32 %v2260_v13, %v627_v11  ;;  %v788_v20 = vpop.f32.mrb[18].mxu1 }
 0x15e   :  { %v629_v21 = vpop.f32.mrb[19].mxu0  ;;  %v1615_v22 = vpop.eup %1614  ;;  %1634 = vtanh.f32 %v1268_v8  ;;  %1316 = vst [vmem:[%s2608_s7 + $0x8] sm:$0xff] %v1268_v8  ;;  %v1237_v24 = vmul.f32 %v1613_v12, %v1221_v6  ;;  %v2341_v25 = vadd.f32 %v2268_v23, %v788_v20  ;;  %v878_v12 = vadd.f32 %v2264_v16, %v2296_v33 }
 0x15f   :  { %v2344_v26 = vadd.f32 %v2262_v14, %v629_v21  ;;  %v790_v27 = vpop.f32.mrb[19].mxu1  ;;  %v1617_v3 = vpop.eup %1616  ;;  %1636 = vpow2.f32 %v1427_v63  ;;  %v1174_v31 = vadd.f32 1.0, %v1615_v22  ;;  %v1398_v21 = vmul.f32 -1.442695, %v879_v59 }
 0x160   :  { %v2351_v32 = vadd.f32 %v2264_v16, %v790_v27  ;;  %v1619_v34 = vpop.eup %1618  ;;  %v1269_v35 = vadd.f32 %v1253_v15, %v1237_v24  ;;  %v967_v36 = vadd.f32 1.0, %v1617_v3  ;;  %1638 = vpow2.f32 %v1412_v9  ;;  %v633_v38 = vpop.f32.mrb[20].mxu0 }
 0x161   :  { %v1621_v39 = vpop.eup %1620  ;;  %v1254_v40 = vmul.f32 %v1619_v34, %v1607_v1  ;;  %1640 = vtanh.f32 %v873_v17  ;;  %v2354_v42 = vadd.f32 %v2260_v13, %v633_v38  ;;  %v794_v43 = vpop.f32.mrb[20].mxu1  ;;  %v880_v22 = vadd.f32 %v2262_v14, %v2306_v46 }
 0x162   :  { %v635_v19 = vpop.f32.mrb[21].mxu0  ;;  %v1623_v44 = vpop.eup %1622  ;;  %1642 = vtanh.f32 %v1269_v35  ;;  %1317 = vst [vmem:[%s2608_s7 + $0x10] sm:$0xff] %v1269_v35  ;;  %v2360_v47 = vadd.f32 %v2268_v23, %v794_v43  ;;  %v877_v35 = vadd.f32 %v2268_v23, %v2292_v30  ;;  %v883_v43 = vadd.f32 %v2260_v13, %v2315_v58 }
 0x163   :  { %v2363_v48 = vadd.f32 %v2262_v14, %v635_v19  ;;  %v796_v50 = vpop.f32.mrb[21].mxu1  ;;  %v1625_v51 = vpop.eup %1624  ;;  %1644 = vrcp.f32 %v967_v36  ;;  %v1063_v53 = vadd.f32 1.0, %v1623_v44  ;;  %v1414_v44 = vmul.f32 -1.442695, %v880_v22 }
 0x164   :  { %v2369_v55 = vadd.f32 %v2264_v16, %v796_v50  ;;  %v1627_v56 = vpop.eup %1626  ;;  %1646 = vpow2.f32 %v1397_v37  ;;  %v639_v60 = vpop.f32.mrb[22].mxu0  ;;  %v884_v50 = vadd.f32 %v2262_v14, %v2321_v0 }
 0x165   :  { %v1629_v61 = vpop.eup %1628  ;;  %v1299_v1 = vmul.f32 %v1627_v56, %v1609_v5  ;;  %1648 = vrcp.f32 %v1063_v53  ;;  %v2374_v2 = vadd.f32 %v2260_v13, %v639_v60  ;;  %v800_v6 = vpop.f32.mrb[22].mxu1  ;;  %v1223_v56 = vld [vmem:[%s2607_s2 + $0x20] sm:$0xff] }
 0x166   :  { %v641_v63 = vpop.f32.mrb[23].mxu0  ;;  %v1631_v7 = vpop.eup %1630  ;;  %v1238_v8 = vmul.f32 %v1629_v61, %v1222_v52  ;;  %1650 = vrcp.f32 %v1174_v31  ;;  %v2377_v9 = vadd.f32 %v2268_v23, %v800_v6  ;;  %v882_v31 = vadd.f32 %v2264_v16, %v2308_v49 }
 0x167   :  { %v2380_v10 = vadd.f32 %v2262_v14, %v641_v63  ;;  %v802_v11 = vpop.f32.mrb[23].mxu1  ;;  %v1633_v41 = vpop.eup %1632  ;;  %1331 = vst [vmem:[%s2609_s6] sm:$0xff] %v1299_v1  ;;  %v968_v5 = vadd.f32 1.0, %v1631_v7  ;;  %1652 = vpow2.f32 %v1428_v54  ;;  %v1399_v7 = vmul.f32 -1.442695, %v883_v43 }
 0x168   :  { %v2388_v15 = vadd.f32 %v2264_v16, %v802_v11  ;;  %v1635_v17 = vpop.eup %1634  ;;  %v1270_v20 = vadd.f32 %v1254_v40, %v1238_v8  ;;  %1654 = vpow2.f32 %v1413_v57  ;;  %v645_v24 = vpop.f32.mrb[24].mxu0  ;;  %v1429_v40 = vmul.f32 -1.442695, %v878_v12 }
 0x169   :  { %v1637_v27 = vpop.eup %1636  ;;  %v1300_v3 = vmul.f32 %v1635_v17, %v1621_v39  ;;  %1656 = vrcp.f32 %v968_v5  ;;  %v2393_v28 = vadd.f32 %v2260_v13, %v645_v24  ;;  %v806_v29 = vpop.f32.mrb[24].mxu1  ;;  %v1430_v17 = vmul.f32 -1.442695, %v882_v31 }
 0x16a   :  { %v647_v34 = vpop.f32.mrb[25].mxu0  ;;  %v1639_v33 = vpop.eup %1638  ;;  %1658 = vtanh.f32 %v1270_v20  ;;  %1318 = vst [vmem:[%s2608_s7 + $0x18] sm:$0xff] %v1270_v20  ;;  %v2401_v46 = vadd.f32 %v2268_v23, %v806_v29  ;;  %v1175_v58 = vadd.f32 1.0, %v1637_v27 }
 0x16b   :  { %v2404_v36 = vadd.f32 %v2262_v14, %v647_v34  ;;  %v808_v37 = vpop.f32.mrb[25].mxu1  ;;  %v1641_v38 = vpop.eup %1640  ;;  %1332 = vst [vmem:[%s2609_s6 + $0x8] sm:$0xff] %v1300_v3  ;;  %v1064_v39 = vadd.f32 1.0, %v1639_v33  ;;  %1660 = vpow2.f32 %v1398_v21 }
 0x16c   :  { %v2412_v19 = vadd.f32 %v2264_v16, %v808_v37  ;;  %v1643_v30 = vpop.eup %1642  ;;  %v651_v52 = vpop.f32.mrb[26].mxu0  ;;  %v1415_v37 = vmul.f32 -1.442695, %v884_v50  ;;  %v886_v50 = vadd.f32 %v2264_v16, %v2326_v4 }
 0x16d   :  { %v1645_v53 = vpop.eup %1644  ;;  %v1301_v54 = vmul.f32 %v1643_v30, %v1625_v51  ;;  %1662 = vrcp.f32 %v1064_v39  ;;  %v2422_v57 = vadd.f32 %v2260_v13, %v651_v52  ;;  %v812_v59 = vpop.f32.mrb[26].mxu1  ;;  %v881_v30 = vadd.f32 %v2268_v23, %v2304_v45  ;;  %v1224_v52 = vld [vmem:[%s2607_s2 + $0x28] sm:$0xff] }
 0x16e   :  { %v653_v60 = vpop.f32.mrb[27].mxu0  ;;  %v1647_v61 = vpop.eup %1646  ;;  %v1255_v1 = vmul.f32 %v1645_v53, %v1633_v41  ;;  %1664 = vtanh.f32 %v877_v35  ;;  %v2425_v49 = vadd.f32 %v2268_v23, %v812_v59 }
 0x16f   :  { %v2428_v0 = vadd.f32 %v2262_v14, %v653_v60  ;;  %v814_v51 = vpop.f32.mrb[27].mxu1  ;;  %v1649_v6 = vpop.eup %1648  ;;  %1333 = vst [vmem:[%s2609_s6 + $0x10] sm:$0xff] %v1301_v54  ;;  %v969_v63 = vadd.f32 1.0, %v1647_v61  ;;  %1666 = vpow2.f32 %v1429_v40 }
 0x170   :  { %v2434_v8 = vadd.f32 %v2264_v16, %v814_v51  ;;  %v1651_v11 = vpop.eup %1650  ;;  %v1239_v41 = vmul.f32 %v1649_v6, %v1223_v56  ;;  %1668 = vpow2.f32 %v1414_v44  ;;  %v657_v5 = vpop.f32.mrb[28].mxu0 }
 0x171   :  { %v1653_v12 = vpop.eup %1652  ;;  %1670 = vrcp.f32 %v969_v63  ;;  %v2437_v20 = vadd.f32 %v2260_v13, %v657_v5  ;;  %v818_v21 = vpop.f32.mrb[28].mxu1 }
 0x172   :  { %v659_v22 = vpop.f32.mrb[29].mxu0  ;;  %v1655_v24 = vpop.eup %1654  ;;  %v1271_v27 = vadd.f32 %v1255_v1, %v1239_v41  ;;  %1672 = vrcp.f32 %v1175_v58  ;;  %v2440_v3 = vadd.f32 %v2268_v23, %v818_v21  ;;  %v1225_v21 = vld [vmem:[%s2607_s2 + $0x30] sm:$0xff] }
 0x173   :  { %v2443_v29 = vadd.f32 %v2262_v14, %v659_v22  ;;  %v820_v34 = vpop.f32.mrb[29].mxu1  ;;  %v1657_v33 = vpop.eup %1656  ;;  %v1065_v35 = vadd.f32 1.0, %v1655_v24  ;;  %1674 = vpow2.f32 %v1399_v7  ;;  %v1416_v22 = vmul.f32 -1.442695, %v2344_v26 }
 0x174   :  { %v2446_v39 = vadd.f32 %v2264_v16, %v820_v34  ;;  %v1659_v40 = vpop.eup %1658  ;;  %1676 = vtanh.f32 %v1271_v27  ;;  %1319 = vst [vmem:[%s2608_s7 + $0x20] sm:$0xff] %v1271_v27  ;;  %v1256_v43 = vmul.f32 %v1657_v33, %v1641_v38  ;;  %v663_v44 = vpop.f32.mrb[30].mxu0  ;;  %v1176_v38 = vadd.f32 1.0, %v1653_v12 }
 0x175   :  { %v1302_v31 = vmul.f32 %v1659_v40, %v1651_v11  ;;  %1678 = vrcp.f32 %v1065_v35  ;;  %v2459_v53 = vadd.f32 %v2260_v13, %v663_v44  ;;  %v824_v54 = vpop.f32.mrb[30].mxu1  ;;  %v665_v56 = vpop.f32.mrb[31].mxu0  ;;  %v1400_v13 = vmul.f32 -1.442695, %v2335_v18 }
 0x176   :  { %v1661_v58 = vpop.eup %1660  ;;  %1680 = vpow2.f32 %v1430_v17  ;;  %v2462_v45 = vadd.f32 %v2268_v23, %v824_v54  ;;  %v2465_v59 = vadd.f32 %v2262_v14, %v665_v56  ;;  %v826_v60 = vpop.f32.mrb[31].mxu1  ;;  %v1431_v11 = vmul.f32 -1.442695, %v886_v50  ;;  %v1226_v54 = vld [vmem:[%s2607_s2 + $0x38] sm:$0xff] }
 0x177   :  { %v1663_v61 = vpop.eup %1662  ;;  %1334 = vst [vmem:[%s2609_s6 + $0x18] sm:$0xff] %v1302_v31  ;;  %v970_v4 = vadd.f32 1.0, %v1661_v58  ;;  %1682 = vpow2.f32 %v1415_v37  ;;  %v2472_v1 = vadd.f32 %v2264_v16, %v826_v60  ;;  %v885_v12 = vadd.f32 %v2268_v23, %v2319_v62 }
 0x178   :  { %v1665_v51 = vpop.eup %1664  ;;  %v1240_v6 = vmul.f32 %v1663_v61, %v1224_v52  ;;  %1684 = vtanh.f32 %v881_v30  ;;  %v1401_v33 = vmul.f32 -1.442695, %v2354_v42  ;;  %v1417_v56 = vmul.f32 -1.442695, %v2363_v48 }
 0x179   :  { %v1667_v63 = vpop.eup %1666  ;;  %1686 = vrcp.f32 %v970_v4  ;;  %v1432_v60 = vmul.f32 -1.442695, %v2351_v32 }
 0x17a   :  { %v1669_v14 = vpop.eup %1668  ;;  %v1272_v7 = vadd.f32 %v1256_v43, %v1240_v6  ;;  %1688 = vrcp.f32 %v1176_v38  ;;  %v1177_v27 = vadd.f32 1.0, %v1667_v63 }
 0x17b   :  { %v1671_v41 = vpop.eup %1670  ;;  %v1066_v5 = vadd.f32 1.0, %v1669_v14  ;;  %1690 = vpow2.f32 %v1400_v13  ;;  %v1402_v13 = vmul.f32 -1.442695, %v2374_v2 }
 0x17c   :  { %v1673_v17 = vpop.eup %1672  ;;  %1692 = vtanh.f32 %v1272_v7  ;;  %1320 = vst [vmem:[%s2608_s7 + $0x28] sm:$0xff] %v1272_v7  ;;  %v1257_v16 = vmul.f32 %v1671_v41, %v1665_v51 }
 0x17d   :  { %v1675_v18 = vpop.eup %1674  ;;  %1694 = vrcp.f32 %v1066_v5  ;;  %v1227_v5 = vld [vmem:[%s2607_s2 + $0x40] sm:$0xff] }
 0x17e   :  { %v1677_v24 = vpop.eup %1676  ;;  %v971_v34 = vadd.f32 1.0, %v1675_v18  ;;  %1696 = vpow2.f32 %v1431_v11  ;;  %v1433_v18 = vmul.f32 -1.442695, %v2369_v55 }
 0x17f   :  { %v1679_v23 = vpop.eup %1678  ;;  %v1303_v62 = vmul.f32 %v1677_v24, %v1673_v17  ;;  %1698 = vtanh.f32 %v885_v12  ;;  %v1418_v12 = vmul.f32 -1.442695, %v2380_v10  ;;  %v1403_v24 = vmul.f32 -1.442695, %v2393_v28 }
 0x180   :  { %v1681_v35 = vpop.eup %1680  ;;  %v1241_v37 = vmul.f32 %v1679_v23, %v1225_v21  ;;  %1700 = vrcp.f32 %v971_v34 }
 0x181   :  { %v1683_v40 = vpop.eup %1682  ;;  %1335 = vst [vmem:[%s2609_s6 + $0x20] sm:$0xff] %v1303_v62  ;;  %1702 = vpow2.f32 %v1416_v22  ;;  %v1178_v31 = vadd.f32 1.0, %v1681_v35 }
 0x182   :  { %v1685_v43 = vpop.eup %1684  ;;  %v1273_v26 = vadd.f32 %v1257_v16, %v1241_v37  ;;  %1704 = vrcp.f32 %v1177_v27  ;;  %v1067_v30 = vadd.f32 1.0, %v1683_v40  ;;  %v1419_v37 = vmul.f32 -1.442695, %v2404_v36 }
 0x183   :  { %v1687_v44 = vpop.eup %1686  ;;  %1706 = vpow2.f32 %v1401_v33 }
 0x184   :  { %v1689_v52 = vpop.eup %1688  ;;  %1708 = vtanh.f32 %v1273_v26  ;;  %1321 = vst [vmem:[%s2608_s7 + $0x30] sm:$0xff] %v1273_v26  ;;  %v1258_v42 = vmul.f32 %v1687_v44, %v1685_v43  ;;  %v1228_v43 = vld [vmem:[%s2607_s2 + $0x48] sm:$0xff] }
 0x185   :  { %v1691_v50 = vpop.eup %1690  ;;  %1710 = vrcp.f32 %v1067_v30  ;;  %v1434_v30 = vmul.f32 -1.442695, %v2388_v15 }
 0x186   :  { %v1693_v58 = vpop.eup %1692  ;;  %v972_v38 = vadd.f32 1.0, %v1691_v50  ;;  %1712 = vtanh.f32 %v2341_v25 }
 0x187   :  { %v1695_v61 = vpop.eup %1694  ;;  %v1304_v4 = vmul.f32 %v1693_v58, %v1689_v52  ;;  %1714 = vrcp.f32 %v1178_v31  ;;  %v1404_v52 = vmul.f32 -1.442695, %v2422_v57 }
 0x188   :  { %v1697_v51 = vpop.eup %1696  ;;  %v1242_v6 = vmul.f32 %v1695_v61, %v1226_v54  ;;  %1716 = vrcp.f32 %v972_v38  ;;  %v1420_v61 = vmul.f32 -1.442695, %v2428_v0 }
 0x189   :  { %v1699_v63 = vpop.eup %1698  ;;  %1336 = vst [vmem:[%s2609_s6 + $0x28] sm:$0xff] %v1304_v4  ;;  %1718 = vpow2.f32 %v1417_v56  ;;  %v1179_v32 = vadd.f32 1.0, %v1697_v51 }
 0x18a   :  { %v1701_v48 = vpop.eup %1700  ;;  %v1274_v14 = vadd.f32 %v1258_v42, %v1242_v6  ;;  %1720 = vpow2.f32 %v1432_v60  ;;  %v1435_v6 = vmul.f32 -1.442695, %v2412_v19 }
 0x18b   :  { %v1703_v25 = vpop.eup %1702  ;;  %v1259_v7 = vmul.f32 %v1701_v48, %v1699_v63  ;;  %1722 = vpow2.f32 %v1402_v13  ;;  %v1229_v13 = vld [vmem:[%s2607_s2 + $0x50] sm:$0xff]  ;;  %v1405_v48 = vmul.f32 -1.442695, %v2437_v20 }
 0x18c   :  { %v1705_v11 = vpop.eup %1704  ;;  %1724 = vtanh.f32 %v1274_v14  ;;  %1322 = vst [vmem:[%s2608_s7 + $0x38] sm:$0xff] %v1274_v14  ;;  %v1068_v2 = vadd.f32 1.0, %v1703_v25 }
 0x18d   :  { %v1707_v41 = vpop.eup %1706  ;;  %1726 = vtanh.f32 %v2360_v47 }
 0x18e   :  { %v1709_v17 = vpop.eup %1708  ;;  %1728 = vrcp.f32 %v1068_v2  ;;  %v973_v16 = vadd.f32 1.0, %v1707_v41 }
 0x18f   :  { %v1711_v21 = vpop.eup %1710  ;;  %v1305_v22 = vmul.f32 %v1709_v17, %v1705_v11  ;;  %1730 = vrcp.f32 %v1179_v32  ;;  %v1230_v17 = vld [vmem:[%s2607_s2 + $0x58] sm:$0xff] }
 0x190   :  { %v1713_v27 = vpop.eup %1712  ;;  %v1243_v34 = vmul.f32 %v1711_v21, %v1227_v5  ;;  %1732 = vrcp.f32 %v973_v16  ;;  %v1421_v5 = vmul.f32 -1.442695, %v2443_v29 }
 0x191   :  { %v1715_v23 = vpop.eup %1714  ;;  %1337 = vst [vmem:[%s2609_s6 + $0x30] sm:$0xff] %v1305_v22  ;;  %1734 = vpow2.f32 %v1418_v12  ;;  %v1406_v22 = vmul.f32 -1.442695, %v2459_v53 }
 0x192   :  { %v1717_v47 = vpop.eup %1716  ;;  %v1275_v10 = vadd.f32 %v1259_v7, %v1243_v34  ;;  %1736 = vpow2.f32 %v1433_v18  ;;  %v1436_v18 = vmul.f32 -1.442695, %v2434_v8 }
 0x193   :  { %v1719_v62 = vpop.eup %1718  ;;  %v1260_v33 = vmul.f32 %v1717_v47, %v1713_v27  ;;  %1738 = vpow2.f32 %v1403_v24 }
 0x194   :  { %v1721_v55 = vpop.eup %1720  ;;  %1740 = vtanh.f32 %v1275_v10  ;;  %1323 = vst [vmem:[%s2608_s7 + $0x40] sm:$0xff] %v1275_v10  ;;  %v1069_v28 = vadd.f32 1.0, %v1719_v62 }
 0x195   :  { %v1723_v35 = vpop.eup %1722  ;;  %v1180_v50 = vadd.f32 1.0, %v1721_v55  ;;  %v1422_v55 = vmul.f32 -1.442695, %v2465_v59 }
 0x196   :  { %v1725_v40 = vpop.eup %1724  ;;  %1742 = vrcp.f32 %v1069_v28  ;;  %v974_v26 = vadd.f32 1.0, %v1723_v35  ;;  %v1231_v35 = vld [vmem:[%s2607_s2 + $0x60] sm:$0xff] }
 0x197   :  { %v1727_v44 = vpop.eup %1726  ;;  %v1306_v31 = vmul.f32 %v1725_v40, %v1715_v23  ;;  %1744 = vtanh.f32 %v2377_v9 }
 0x198   :  { %v1729_v42 = vpop.eup %1728  ;;  %1746 = vrcp.f32 %v974_v26 }
 0x199   :  { %v1731_v54 = vpop.eup %1730  ;;  %1338 = vst [vmem:[%s2609_s6 + $0x38] sm:$0xff] %v1306_v31  ;;  %v1244_v36 = vmul.f32 %v1729_v42, %v1228_v43  ;;  %1748 = vpow2.f32 %v1419_v37  ;;  %v1437_v43 = vmul.f32 -1.442695, %v2446_v39 }
 0x19a   :  { %v1733_v56 = vpop.eup %1732  ;;  %1750 = vpow2.f32 %v1434_v30 }
 0x19b   :  { %v1735_v58 = vpop.eup %1734  ;;  %v1276_v15 = vadd.f32 %v1260_v33, %v1244_v36  ;;  %v1261_v38 = vmul.f32 %v1733_v56, %v1727_v44  ;;  %1752 = vpow2.f32 %v1404_v52 }
 0x19c   :  { %v1737_v60 = vpop.eup %1736  ;;  %1754 = vrcp.f32 %v1180_v50  ;;  %v1070_v9 = vadd.f32 1.0, %v1735_v58  ;;  %v1232_v58 = vld [vmem:[%s2607_s2 + $0x68] sm:$0xff] }
 0x19d   :  { %v1739_v57 = vpop.eup %1738  ;;  %1756 = vtanh.f32 %v1276_v15  ;;  %1324 = vst [vmem:[%s2608_s7 + $0x48] sm:$0xff] %v1276_v15  ;;  %v1181_v25 = vadd.f32 1.0, %v1737_v60  ;;  %v1438_v60 = vmul.f32 -1.442695, %v2472_v1 }
 0x19e   :  { %v1741_v4 = vpop.eup %1740  ;;  %1758 = vrcp.f32 %v1070_v9  ;;  %v975_v51 = vadd.f32 1.0, %v1739_v57 }
 0x19f   :  { %v1307_v63 = vmul.f32 %v1741_v4, %v1731_v54  ;;  %1760 = vtanh.f32 %v2401_v46 }
 0x1a0   :  { %v1743_v14 = vpop.eup %1742  ;;  %1762 = vrcp.f32 %v975_v51 }
 0x1a1   :  { %v1745_v7 = vpop.eup %1744  ;;  %1339 = vst [vmem:[%s2609_s6 + $0x40] sm:$0xff] %v1307_v63  ;;  %v1245_v0 = vmul.f32 %v1743_v14, %v1229_v13  ;;  %1764 = vpow2.f32 %v1420_v61 }
 0x1a2   :  { %v1747_v32 = vpop.eup %1746  ;;  %1766 = vpow2.f32 %v1435_v6 }
 0x1a3   :  { %v1749_v11 = vpop.eup %1748  ;;  %v1277_v2 = vadd.f32 %v1261_v38, %v1245_v0  ;;  %v1262_v19 = vmul.f32 %v1747_v32, %v1745_v7  ;;  %1768 = vpow2.f32 %v1405_v48 }
 0x1a4   :  { %v1751_v41 = vpop.eup %1750  ;;  %1770 = vrcp.f32 %v1181_v25  ;;  %v1071_v46 = vadd.f32 1.0, %v1749_v11  ;;  %v1233_v25 = vld [vmem:[%s2607_s2 + $0x70] sm:$0xff] }
 0x1a5   :  { %v1753_v20 = vpop.eup %1752  ;;  %1772 = vtanh.f32 %v1277_v2  ;;  %1325 = vst [vmem:[%s2608_s7 + $0x50] sm:$0xff] %v1277_v2  ;;  %v1182_v34 = vadd.f32 1.0, %v1751_v41 }
 0x1a6   :  { %v1755_v12 = vpop.eup %1754  ;;  %1774 = vrcp.f32 %v1071_v46  ;;  %v976_v16 = vadd.f32 1.0, %v1753_v20 }
 0x1a7   :  { %v1757_v21 = vpop.eup %1756  ;;  %1776 = vtanh.f32 %v2425_v49 }
 0x1a8   :  { %v1759_v24 = vpop.eup %1758  ;;  %v1308_v27 = vmul.f32 %v1757_v21, %v1755_v12  ;;  %1778 = vrcp.f32 %v976_v16 }
 0x1a9   :  { %v1761_v23 = vpop.eup %1760  ;;  %v1246_v29 = vmul.f32 %v1759_v24, %v1230_v17  ;;  %1780 = vpow2.f32 %v1421_v5  ;;  %v1234_v17 = vld [vmem:[%s2607_s2 + $0x78] sm:$0xff] }
 0x1aa   :  { %v1763_v47 = vpop.eup %1762  ;;  %1340 = vst [vmem:[%s2609_s6 + $0x48] sm:$0xff] %v1308_v27  ;;  %1782 = vpow2.f32 %v1436_v18 }
 0x1ab   :  { %v1765_v10 = vpop.eup %1764  ;;  %v1278_v8 = vadd.f32 %v1262_v19, %v1246_v29  ;;  %v1263_v62 = vmul.f32 %v1763_v47, %v1761_v23  ;;  %1784 = vpow2.f32 %v1406_v22 }
 0x1ac   :  { %v1767_v49 = vpop.eup %1766  ;;  %1786 = vrcp.f32 %v1182_v34  ;;  %v1072_v53 = vadd.f32 1.0, %v1765_v10 }
 0x1ad   :  { %v1769_v33 = vpop.eup %1768  ;;  %1788 = vtanh.f32 %v1278_v8  ;;  %1326 = vst [vmem:[%s2608_s7 + $0x58] sm:$0xff] %v1278_v8  ;;  %v1183_v44 = vadd.f32 1.0, %v1767_v49 }
 0x1ae   :  { %v1771_v28 = vpop.eup %1770  ;;  %1790 = vrcp.f32 %v1072_v53  ;;  %v977_v37 = vadd.f32 1.0, %v1769_v33 }
 0x1af   :  { %v1773_v40 = vpop.eup %1772  ;;  %1792 = vtanh.f32 %v2440_v3 }
 0x1b0   :  { %v1775_v26 = vpop.eup %1774  ;;  %v1309_v30 = vmul.f32 %v1773_v40, %v1771_v28  ;;  %1794 = vrcp.f32 %v977_v37 }
 0x1b1   :  { %v1777_v31 = vpop.eup %1776  ;;  %v1247_v52 = vmul.f32 %v1775_v26, %v1231_v35  ;;  %1796 = vpow2.f32 %v1422_v55 }
 0x1b2   :  { %v1779_v59 = vpop.eup %1778  ;;  %1341 = vst [vmem:[%s2609_s6 + $0x50] sm:$0xff] %v1309_v30  ;;  %1798 = vpow2.f32 %v1437_v43 }
 0x1b3   :  { %v1781_v42 = vpop.eup %1780  ;;  %v1279_v50 = vadd.f32 %v1263_v62, %v1247_v52  ;;  %v1264_v54 = vmul.f32 %v1779_v59, %v1777_v31  ;;  %1800 = vrcp.f32 %v1183_v44 }
 0x1b4   :  { %v1783_v36 = vpop.eup %1782  ;;  %v1073_v3 = vadd.f32 1.0, %v1781_v42 }
 0x1b5   :  { %v1785_v39 = vpop.eup %1784  ;;  %1802 = vtanh.f32 %v1279_v50  ;;  %1327 = vst [vmem:[%s2608_s7 + $0x60] sm:$0xff] %v1279_v50  ;;  %v1184_v61 = vadd.f32 1.0, %v1783_v36 }
 0x1b6   :  { %v1787_v56 = vpop.eup %1786  ;;  %1804 = vrcp.f32 %v1073_v3  ;;  %v978_v15 = vadd.f32 1.0, %v1785_v39 }
 0x1b7   :  { %v1789_v38 = vpop.eup %1788  ;;  %1806 = vtanh.f32 %v2462_v45 }
 0x1b8   :  { %v1791_v9 = vpop.eup %1790  ;;  %v1310_v57 = vmul.f32 %v1789_v38, %v1787_v56  ;;  %1808 = vrcp.f32 %v978_v15 }
 0x1b9   :  { %v1793_v4 = vpop.eup %1792  ;;  %v1248_v13 = vmul.f32 %v1791_v9, %v1232_v58  ;;  %1810 = vpow2.f32 %v1438_v60 }
 0x1ba   :  { %v1795_v51 = vpop.eup %1794  ;;  %1342 = vst [vmem:[%s2609_s6 + $0x58] sm:$0xff] %v1310_v57  ;;  %1812 = vrcp.f32 %v1184_v61 }
 0x1bb   :  { %v1797_v6 = vpop.eup %1796  ;;  %v1280_v63 = vadd.f32 %v1264_v54, %v1248_v13  ;;  %v1265_v48 = vmul.f32 %v1795_v51, %v1793_v4 }
 0x1bc   :  { %v1074_v14 = vadd.f32 1.0, %v1797_v6  ;;  %v1799_v45 = vpop.eup %1798 }
 0x1bd   :  { %1814 = vtanh.f32 %v1280_v63  ;;  %1328 = vst [vmem:[%s2608_s7 + $0x68] sm:$0xff] %v1280_v63  ;;  %v1801_v1 = vpop.eup %1800  ;;  %v1185_v11 = vadd.f32 1.0, %v1799_v45 }
 0x1be   :  { %1816 = vrcp.f32 %v1074_v14 }
 0x1bf   :  { %v1803_v7 = vpop.eup %1802  ;;  %1818 = vrcp.f32 %v1185_v11 }
 0x1c0   :  { %v1805_v0 = vpop.eup %1804  ;;  %v1311_v32 = vmul.f32 %v1803_v7, %v1801_v1 }
 0x1c1   :  { %v1807_v2 = vpop.eup %1806  ;;  %v1249_v19 = vmul.f32 %v1805_v0, %v1233_v25 }
 0x1c2   :  { %v1809_v41 = vpop.eup %1808  ;;  %1343 = vst [vmem:[%s2609_s6 + $0x60] sm:$0xff] %v1311_v32 }
 0x1c3   :  { %v1281_v46 = vadd.f32 %v1265_v48, %v1249_v19  ;;  %v1266_v20 = vmul.f32 %v1809_v41, %v1807_v2  ;;  %v1811_v5 = vpop.eup %1810 }
 0x1c4   :  { %v1813_v12 = vpop.eup %1812  ;;  %v1186_v22 = vadd.f32 1.0, %v1811_v5 }
 0x1c5   :  { %1820 = vtanh.f32 %v1281_v46  ;;  %1329 = vst [vmem:[%s2608_s7 + $0x70] sm:$0xff] %v1281_v46 }
 0x1c6   :  { %1822 = vrcp.f32 %v1186_v22 }
 0x1c7   :  { %v1815_v16 = vpop.eup %1814 }
 0x1c8   :  { %v1817_v18 = vpop.eup %1816  ;;  %v1312_v21 = vmul.f32 %v1815_v16, %v1813_v12 }
 0x1c9   :  { %v1250_v24 = vmul.f32 %v1817_v18, %v1234_v17  ;;  %v1819_v34 = vpop.eup %1818 }
 0x1ca   :  { %1344 = vst [vmem:[%s2609_s6 + $0x68] sm:$0xff] %v1312_v21 }
 0x1cb   :  { %v1282_v27 = vadd.f32 %v1266_v20, %v1250_v24 }
 0x1cd   :  { %1824 = vtanh.f32 %v1282_v27  ;;  %1330 = vst [vmem:[%s2608_s7 + $0x78] sm:$0xff] %v1282_v27 }
 0x1cf   :  { %v1821_v23 = vpop.eup %1820 }
 0x1d0   :  { %v1313_v29 = vmul.f32 %v1821_v23, %v1819_v34  ;;  %v1823_v47 = vpop.eup %1822 }
 0x1d2   :  { %1345 = vst [vmem:[%s2609_s6 + $0x70] sm:$0xff] %v1313_v29 }
 0x1d7   :  { %v1825_v10 = vpop.eup %1824 }
 0x1d8   :  { %v1314_v8 = vmul.f32 %v1825_v10, %v1823_v47 }
 0x1da   :  { %1346 = vst [vmem:[%s2609_s6 + $0x78] sm:$0xff] %v1314_v8 }

</bundles_post_ra>
